<compile_context>
chip_gen: v5e
topology: v5e:2x2
jax: 0.10.0
libtpu: 0.0.40
codegen_flags: <defaults>
</compile_context>

<pallas_src>
import functools

import jax
import jax.numpy as jnp
from jax import lax
from jax.experimental import pallas as pl
from jax.experimental.pallas import tpu as pltpu


def _dwsep_kernel(x_ref, dww_ref, dwb_ref, pw_ref, pwb_ref, o_ref,
                  xp_scr, dw_scr, *,
                  K, stride, padding, C, Cout, H, W, th, Wo):
    # x_ref  : (1, C, H, W)      one batch element, unpadded (VMEM)
    # dww_ref: (C*K*K,)          depthwise weights, [c, ky, kx] row-major (SMEM)
    # dwb_ref: (C,)              depthwise bias (SMEM)
    # pw_ref : (Cout, C)         pointwise weight matrix (VMEM)
    # pwb_ref: (Cout, 1)         pointwise bias column (VMEM)
    # o_ref  : (1, Cout, th*Wo)  lane-dense output block
    # xp_scr : (C, Hp, Wp)       zero-padded input staging (VMEM scratch, f32)
    # dw_scr : (C, th, Wo)       depthwise results staging (VMEM scratch, f32)

    # --- build the zero-padded input tile in VMEM (replaces a separate XLA pad)
    if padding > 0:
        xp_scr[...] = jnp.zeros_like(xp_scr)
        xp_scr[:, padding:padding + H, padding:padding + W] = \
            x_ref[0].astype(jnp.float32)
    else:
        xp_scr[...] = x_ref[0].astype(jnp.float32)

    # --- depthwise conv: per channel, K row-slab loads, K static lane slices
    #     each; bias folded into the accumulator init.
    for c in range(C):
        acc = jnp.full((th, Wo), dwb_ref[c], dtype=jnp.float32)
        for ky in range(K):
            if stride == 1:
                row = xp_scr[c, ky:ky + th, :]                       # (th, Wp)
            else:
                # strided sublane load straight from the ref
                row = xp_scr[c, pl.ds(ky, th, stride=stride), :]     # (th, Wp)
            for kx in range(K):
                if stride == 1:
                    tap = lax.slice(row, (0, kx), (th, kx + Wo))
                else:
                    tap = lax.slice(row, (0, kx),
                                    (th, kx + (Wo - 1) * stride + 1),
                                    strides=(1, stride))
                acc = acc + dww_ref[c * K * K + ky * K + kx] * tap
        dw_scr[c] = acc

    # --- pointwise 1x1 conv: one merged relayout + one small MXU matmul,
    #     then a single lane/sublane-dense block store.
    dw_flat = dw_scr[...].reshape(C, th * Wo)                        # (C, th*Wo)
    out = jnp.dot(pw_ref[...], dw_flat,
                  preferred_element_type=jnp.float32)                # (Cout, th*Wo)
    out = out + pwb_ref[...]                                         # (Cout,1) bcast
    o_ref[0, :, :] = out.astype(o_ref.dtype)                         # single store


def depthwise_separable_conv2d(x_nchw, dw_w, dw_b, pw_w, pw_b, *, stride, padding):
    """x_nchw: (N, C, H, W); dw_w: (C, 1, K, K); dw_b: (C,);
    pw_w: (Cout, C, 1, 1); pw_b: (Cout,). Returns (N, Cout, Ho, Wo)."""
    N, C, H, W = x_nchw.shape
    K = dw_w.shape[-1]
    Cout = pw_w.shape[0]
    Ho = (H + 2 * padding - K) // stride + 1
    Wo = (W + 2 * padding - K) // stride + 1
    Hp, Wp = H + 2 * padding, W + 2 * padding

    # One row-tile covering the whole output height per grid step (grid=(N,)).
    th = Ho
    assert Ho % th == 0, (Ho, th)  # guard for future strip-tiling choices

    # Tiny weight tensors: depthwise as SMEM scalar tables, pointwise as a
    # (Cout, C) VMEM matrix feeding the MXU + a (Cout, 1) bias column.
    dww = dw_w.reshape(C * K * K).astype(jnp.float32)     # [c, ky, kx]
    dwb = dw_b.astype(jnp.float32)                        # (C,)
    pww = pw_w.reshape(Cout, C).astype(jnp.float32)       # (Cout, C)
    pwb = pw_b.reshape(Cout, 1).astype(jnp.float32)       # (Cout, 1)

    kernel = functools.partial(_dwsep_kernel, K=K, stride=stride, padding=padding,
                               C=C, Cout=Cout, H=H, W=W, th=th, Wo=Wo)

    out_flat = pl.pallas_call(
        kernel,
        out_shape=jax.ShapeDtypeStruct((N, Cout, Ho * Wo), x_nchw.dtype),
        grid_spec=pltpu.PrefetchScalarGridSpec(
            num_scalar_prefetch=0,
            grid=(N,),
            in_specs=[
                # one unpadded batch element per step
                pl.BlockSpec((1, C, H, W), lambda n: (n, 0, 0, 0)),
                pl.BlockSpec(memory_space=pltpu.MemorySpace.SMEM),   # dw weights
                pl.BlockSpec(memory_space=pltpu.MemorySpace.SMEM),   # dw bias
                pl.BlockSpec((Cout, C), lambda n: (0, 0)),           # pw weight (VMEM)
                pl.BlockSpec((Cout, 1), lambda n: (0, 0)),           # pw bias  (VMEM)
            ],
            out_specs=pl.BlockSpec((1, Cout, th * Wo), lambda n: (n, 0, 0)),
            scratch_shapes=[
                pltpu.VMEM((C, Hp, Wp), jnp.float32),    # padded-input staging
                pltpu.VMEM((C, th, Wo), jnp.float32),    # depthwise staging
            ],
        ),
        compiler_params=pltpu.CompilerParams(
            dimension_semantics=("parallel",),
            vmem_limit_bytes=32 * 1024 * 1024,
        ),
    )(x_nchw, dww, dwb, pww, pwb)

    # Cheap split of the lane-dense last dim back to (Ho, Wo); stays NCHW.
    return out_flat.reshape(N, Cout, Ho, Wo)


def _reference(x_nchw, dw_w, dw_b, pw_w, pw_b, *, stride, padding):
    C = x_nchw.shape[1]
    y = lax.conv_general_dilated(
        x_nchw, dw_w, window_strides=(stride, stride),
        padding=((padding, padding), (padding, padding)),
        feature_group_count=C,
        dimension_numbers=("NCHW", "OIHW", "NCHW"))
    y = y + dw_b[None, :, None, None]
    z = lax.conv_general_dilated(
        y, pw_w, window_strides=(1, 1), padding=((0, 0), (0, 0)),
        dimension_numbers=("NCHW", "OIHW", "NCHW"))
    return z + pw_b[None, :, None, None]


if __name__ == "__main__":
    # module config: in_channels=4, out_channels=8, kernel_size=3, stride=1, padding=1
    N, Cin, H, W = 2, 4, 16, 16
    Cout, K, STRIDE, PAD = 8, 3, 1, 1

    key = jax.random.PRNGKey(0)
    k1, k2, k3, k4, k5 = jax.random.split(key, 5)
    x = jax.random.normal(k1, (N, Cin, H, W), jnp.float32)
    dw_w = jax.random.normal(k2, (Cin, 1, K, K), jnp.float32) * 0.1
    dw_b = jax.random.normal(k3, (Cin,), jnp.float32) * 0.1
    pw_w = jax.random.normal(k4, (Cout, Cin, 1, 1), jnp.float32) * 0.1
    pw_b = jax.random.normal(k5, (Cout,), jnp.float32) * 0.1

    out = depthwise_separable_conv2d(x, dw_w, dw_b, pw_w, pw_b,
                                     stride=STRIDE, padding=PAD)
    out = jax.block_until_ready(out)

    ref = _reference(x, dw_w, dw_b, pw_w, pw_b, stride=STRIDE, padding=PAD)
    assert out.shape == (N, Cout, H, W), out.shape
    assert jnp.allclose(out, ref, atol=1e-4, rtol=1e-4)

    print("KERNEL_OK")
</pallas_src>

<mosaic_0001>
module attributes {stable_mosaic.version = 11 : i64} {
  func.func @_dwsep_kernel(%arg0: i32, %arg1: memref<1x4x16x16xf32, #tpu.memory_space<vmem>>, %arg2: memref<36xf32, #tpu.memory_space<smem>>, %arg3: memref<4xf32, #tpu.memory_space<smem>>, %arg4: memref<8x4xf32, #tpu.memory_space<vmem>>, %arg5: memref<8x1xf32, #tpu.memory_space<vmem>>, %arg6: memref<1x8x256xf32, #tpu.memory_space<vmem>>, %arg7: memref<4x18x18xf32, #tpu.memory_space<vmem>>, %arg8: memref<4x16x16xf32, #tpu.memory_space<vmem>>) attributes {dimension_semantics = [#tpu.dimension_semantics<parallel>], iteration_bounds = array<i64: 2>, scalar_prefetch = 0 : i64, scratch_operands = 2 : i64, tpu.core_type = #tpu.core_type<tc>, window_params = [{transform_indices = @transform_0, window_bounds = array<i64: 1, 4, 16, 16>}, {transform_indices = @transform_1, window_bounds = array<i64: 36>}, {transform_indices = @transform_2, window_bounds = array<i64: 4>}, {pipeline_mode = #tpu.pipeline_mode<synchronous>, transform_indices = @transform_3, window_bounds = array<i64: 8, 4>}, {pipeline_mode = #tpu.pipeline_mode<synchronous>, transform_indices = @transform_4, window_bounds = array<i64: 8, 1>}, {transform_indices = @transform_5, window_bounds = array<i64: 1, 8, 256>}]} {
    %cst = arith.constant 0.000000e+00 : f32
    %0 = vector.broadcast %cst : f32 to vector<4x18x18xf32>
    %c0 = arith.constant 0 : index
    %c0_0 = arith.constant 0 : index
    %c0_1 = arith.constant 0 : index
    %1 = vector.load %arg7[%c0, %c0_0, %c0_1] : memref<4x18x18xf32, #tpu.memory_space<vmem>>, vector<4x18x18xf32>
    tpu.vector_store %arg7[%c0, %c0_0, %c0_1], %0 {strides = array<i32>} : memref<4x18x18xf32, #tpu.memory_space<vmem>>, vector<4x18x18xf32>,
    %c0_2 = arith.constant 0 : index
    %c0_3 = arith.constant 0 : index
    %c0_4 = arith.constant 0 : index
    %c0_5 = arith.constant 0 : index
    %2 = vector.load %arg1[%c0_2, %c0_3, %c0_4, %c0_5] : memref<1x4x16x16xf32, #tpu.memory_space<vmem>>, vector<1x4x16x16xf32>
    %3 = vector.shape_cast %2 : vector<1x4x16x16xf32> to vector<4x16x16xf32>
    %c0_6 = arith.constant 0 : index
    %c1 = arith.constant 1 : index
    %c1_7 = arith.constant 1 : index
    %4 = vector.load %arg7[%c0_6, %c1, %c1_7] : memref<4x18x18xf32, #tpu.memory_space<vmem>>, vector<4x16x16xf32>
    tpu.vector_store %arg7[%c0_6, %c1, %c1_7], %3 {strides = array<i32>} : memref<4x18x18xf32, #tpu.memory_space<vmem>>, vector<4x16x16xf32>,
    %c0_8 = arith.constant 0 : index
    %5 = memref.load %arg3[%c0_8] : memref<4xf32, #tpu.memory_space<smem>>
    %6 = vector.broadcast %5 : f32 to vector<16x16xf32>
    %c0_9 = arith.constant 0 : index
    %c0_10 = arith.constant 0 : index
    %c0_11 = arith.constant 0 : index
    %7 = vector.load %arg7[%c0_9, %c0_10, %c0_11] : memref<4x18x18xf32, #tpu.memory_space<vmem>>, vector<1x16x18xf32>
    %8 = vector.shape_cast %7 : vector<1x16x18xf32> to vector<16x18xf32>
    %9 = vector.extract_strided_slice %8 {offsets = [0, 0], sizes = [16, 16], strides = [1, 1]} : vector<16x18xf32> to vector<16x16xf32>
    %c0_12 = arith.constant 0 : index
    %10 = memref.load %arg2[%c0_12] : memref<36xf32, #tpu.memory_space<smem>>
    %11 = vector.broadcast %10 : f32 to vector<16x16xf32>
    %12 = arith.mulf %11, %9 : vector<16x16xf32>
    %13 = arith.addf %6, %12 : vector<16x16xf32>
    %14 = vector.extract_strided_slice %8 {offsets = [0, 1], sizes = [16, 16], strides = [1, 1]} : vector<16x18xf32> to vector<16x16xf32>
    %c1_13 = arith.constant 1 : index
    %15 = memref.load %arg2[%c1_13] : memref<36xf32, #tpu.memory_space<smem>>
    %16 = vector.broadcast %15 : f32 to vector<16x16xf32>
    %17 = arith.mulf %16, %14 : vector<16x16xf32>
    %18 = arith.addf %13, %17 : vector<16x16xf32>
    %19 = vector.extract_strided_slice %8 {offsets = [0, 2], sizes = [16, 16], strides = [1, 1]} : vector<16x18xf32> to vector<16x16xf32>
    %c2 = arith.constant 2 : index
    %20 = memref.load %arg2[%c2] : memref<36xf32, #tpu.memory_space<smem>>
    %21 = vector.broadcast %20 : f32 to vector<16x16xf32>
    %22 = arith.mulf %21, %19 : vector<16x16xf32>
    %23 = arith.addf %18, %22 : vector<16x16xf32>
    %c0_14 = arith.constant 0 : index
    %c1_15 = arith.constant 1 : index
    %c0_16 = arith.constant 0 : index
    %24 = vector.load %arg7[%c0_14, %c1_15, %c0_16] : memref<4x18x18xf32, #tpu.memory_space<vmem>>, vector<1x16x18xf32>
    %25 = vector.shape_cast %24 : vector<1x16x18xf32> to vector<16x18xf32>
    %26 = vector.extract_strided_slice %25 {offsets = [0, 0], sizes = [16, 16], strides = [1, 1]} : vector<16x18xf32> to vector<16x16xf32>
    %c3 = arith.constant 3 : index
    %27 = memref.load %arg2[%c3] : memref<36xf32, #tpu.memory_space<smem>>
    %28 = vector.broadcast %27 : f32 to vector<16x16xf32>
    %29 = arith.mulf %28, %26 : vector<16x16xf32>
    %30 = arith.addf %23, %29 : vector<16x16xf32>
    %31 = vector.extract_strided_slice %25 {offsets = [0, 1], sizes = [16, 16], strides = [1, 1]} : vector<16x18xf32> to vector<16x16xf32>
    %c4 = arith.constant 4 : index
    %32 = memref.load %arg2[%c4] : memref<36xf32, #tpu.memory_space<smem>>
    %33 = vector.broadcast %32 : f32 to vector<16x16xf32>
    %34 = arith.mulf %33, %31 : vector<16x16xf32>
    %35 = arith.addf %30, %34 : vector<16x16xf32>
    %36 = vector.extract_strided_slice %25 {offsets = [0, 2], sizes = [16, 16], strides = [1, 1]} : vector<16x18xf32> to vector<16x16xf32>
    %c5 = arith.constant 5 : index
    %37 = memref.load %arg2[%c5] : memref<36xf32, #tpu.memory_space<smem>>
    %38 = vector.broadcast %37 : f32 to vector<16x16xf32>
    %39 = arith.mulf %38, %36 : vector<16x16xf32>
    %40 = arith.addf %35, %39 : vector<16x16xf32>
    %c0_17 = arith.constant 0 : index
    %c2_18 = arith.constant 2 : index
    %c0_19 = arith.constant 0 : index
    %41 = vector.load %arg7[%c0_17, %c2_18, %c0_19] : memref<4x18x18xf32, #tpu.memory_space<vmem>>, vector<1x16x18xf32>
    %42 = vector.shape_cast %41 : vector<1x16x18xf32> to vector<16x18xf32>
    %43 = vector.extract_strided_slice %42 {offsets = [0, 0], sizes = [16, 16], strides = [1, 1]} : vector<16x18xf32> to vector<16x16xf32>
    %c6 = arith.constant 6 : index
    %44 = memref.load %arg2[%c6] : memref<36xf32, #tpu.memory_space<smem>>
    %45 = vector.broadcast %44 : f32 to vector<16x16xf32>
    %46 = arith.mulf %45, %43 : vector<16x16xf32>
    %47 = arith.addf %40, %46 : vector<16x16xf32>
    %48 = vector.extract_strided_slice %42 {offsets = [0, 1], sizes = [16, 16], strides = [1, 1]} : vector<16x18xf32> to vector<16x16xf32>
    %c7 = arith.constant 7 : index
    %49 = memref.load %arg2[%c7] : memref<36xf32, #tpu.memory_space<smem>>
    %50 = vector.broadcast %49 : f32 to vector<16x16xf32>
    %51 = arith.mulf %50, %48 : vector<16x16xf32>
    %52 = arith.addf %47, %51 : vector<16x16xf32>
    %53 = vector.extract_strided_slice %42 {offsets = [0, 2], sizes = [16, 16], strides = [1, 1]} : vector<16x18xf32> to vector<16x16xf32>
    %c8 = arith.constant 8 : index
    %54 = memref.load %arg2[%c8] : memref<36xf32, #tpu.memory_space<smem>>
    %55 = vector.broadcast %54 : f32 to vector<16x16xf32>
    %56 = arith.mulf %55, %53 : vector<16x16xf32>
    %57 = arith.addf %52, %56 : vector<16x16xf32>
    %c0_20 = arith.constant 0 : index
    %c0_21 = arith.constant 0 : index
    %c0_22 = arith.constant 0 : index
    %58 = vector.load %arg8[%c0_20, %c0_21, %c0_22] : memref<4x16x16xf32, #tpu.memory_space<vmem>>, vector<1x16x16xf32>
    %59 = vector.shape_cast %58 : vector<1x16x16xf32> to vector<16x16xf32>
    %60 = vector.shape_cast %57 : vector<16x16xf32> to vector<1x16x16xf32>
    tpu.vector_store %arg8[%c0_20, %c0_21, %c0_22], %60 {strides = array<i32>} : memref<4x16x16xf32, #tpu.memory_space<vmem>>, vector<1x16x16xf32>,
    %c1_23 = arith.constant 1 : index
    %61 = memref.load %arg3[%c1_23] : memref<4xf32, #tpu.memory_space<smem>>
    %62 = vector.broadcast %61 : f32 to vector<16x16xf32>
    %c1_24 = arith.constant 1 : index
    %c0_25 = arith.constant 0 : index
    %c0_26 = arith.constant 0 : index
    %63 = vector.load %arg7[%c1_24, %c0_25, %c0_26] : memref<4x18x18xf32, #tpu.memory_space<vmem>>, vector<1x16x18xf32>
    %64 = vector.shape_cast %63 : vector<1x16x18xf32> to vector<16x18xf32>
    %65 = vector.extract_strided_slice %64 {offsets = [0, 0], sizes = [16, 16], strides = [1, 1]} : vector<16x18xf32> to vector<16x16xf32>
    %c9 = arith.constant 9 : index
    %66 = memref.load %arg2[%c9] : memref<36xf32, #tpu.memory_space<smem>>
    %67 = vector.broadcast %66 : f32 to vector<16x16xf32>
    %68 = arith.mulf %67, %65 : vector<16x16xf32>
    %69 = arith.addf %62, %68 : vector<16x16xf32>
    %70 = vector.extract_strided_slice %64 {offsets = [0, 1], sizes = [16, 16], strides = [1, 1]} : vector<16x18xf32> to vector<16x16xf32>
    %c10 = arith.constant 10 : index
    %71 = memref.load %arg2[%c10] : memref<36xf32, #tpu.memory_space<smem>>
    %72 = vector.broadcast %71 : f32 to vector<16x16xf32>
    %73 = arith.mulf %72, %70 : vector<16x16xf32>
    %74 = arith.addf %69, %73 : vector<16x16xf32>
    %75 = vector.extract_strided_slice %64 {offsets = [0, 2], sizes = [16, 16], strides = [1, 1]} : vector<16x18xf32> to vector<16x16xf32>
    %c11 = arith.constant 11 : index
    %76 = memref.load %arg2[%c11] : memref<36xf32, #tpu.memory_space<smem>>
    %77 = vector.broadcast %76 : f32 to vector<16x16xf32>
    %78 = arith.mulf %77, %75 : vector<16x16xf32>
    %79 = arith.addf %74, %78 : vector<16x16xf32>
    %c1_27 = arith.constant 1 : index
    %c1_28 = arith.constant 1 : index
    %c0_29 = arith.constant 0 : index
    %80 = vector.load %arg7[%c1_27, %c1_28, %c0_29] : memref<4x18x18xf32, #tpu.memory_space<vmem>>, vector<1x16x18xf32>
    %81 = vector.shape_cast %80 : vector<1x16x18xf32> to vector<16x18xf32>
    %82 = vector.extract_strided_slice %81 {offsets = [0, 0], sizes = [16, 16], strides = [1, 1]} : vector<16x18xf32> to vector<16x16xf32>
    %c12 = arith.constant 12 : index
    %83 = memref.load %arg2[%c12] : memref<36xf32, #tpu.memory_space<smem>>
    %84 = vector.broadcast %83 : f32 to vector<16x16xf32>
    %85 = arith.mulf %84, %82 : vector<16x16xf32>
    %86 = arith.addf %79, %85 : vector<16x16xf32>
    %87 = vector.extract_strided_slice %81 {offsets = [0, 1], sizes = [16, 16], strides = [1, 1]} : vector<16x18xf32> to vector<16x16xf32>
    %c13 = arith.constant 13 : index
    %88 = memref.load %arg2[%c13] : memref<36xf32, #tpu.memory_space<smem>>
    %89 = vector.broadcast %88 : f32 to vector<16x16xf32>
    %90 = arith.mulf %89, %87 : vector<16x16xf32>
    %91 = arith.addf %86, %90 : vector<16x16xf32>
    %92 = vector.extract_strided_slice %81 {offsets = [0, 2], sizes = [16, 16], strides = [1, 1]} : vector<16x18xf32> to vector<16x16xf32>
    %c14 = arith.constant 14 : index
    %93 = memref.load %arg2[%c14] : memref<36xf32, #tpu.memory_space<smem>>
    %94 = vector.broadcast %93 : f32 to vector<16x16xf32>
    %95 = arith.mulf %94, %92 : vector<16x16xf32>
    %96 = arith.addf %91, %95 : vector<16x16xf32>
    %c1_30 = arith.constant 1 : index
    %c2_31 = arith.constant 2 : index
    %c0_32 = arith.constant 0 : index
    %97 = vector.load %arg7[%c1_30, %c2_31, %c0_32] : memref<4x18x18xf32, #tpu.memory_space<vmem>>, vector<1x16x18xf32>
    %98 = vector.shape_cast %97 : vector<1x16x18xf32> to vector<16x18xf32>
    %99 = vector.extract_strided_slice %98 {offsets = [0, 0], sizes = [16, 16], strides = [1, 1]} : vector<16x18xf32> to vector<16x16xf32>
    %c15 = arith.constant 15 : index
    %100 = memref.load %arg2[%c15] : memref<36xf32, #tpu.memory_space<smem>>
    %101 = vector.broadcast %100 : f32 to vector<16x16xf32>
    %102 = arith.mulf %101, %99 : vector<16x16xf32>
    %103 = arith.addf %96, %102 : vector<16x16xf32>
    %104 = vector.extract_strided_slice %98 {offsets = [0, 1], sizes = [16, 16], strides = [1, 1]} : vector<16x18xf32> to vector<16x16xf32>
    %c16 = arith.constant 16 : index
    %105 = memref.load %arg2[%c16] : memref<36xf32, #tpu.memory_space<smem>>
    %106 = vector.broadcast %105 : f32 to vector<16x16xf32>
    %107 = arith.mulf %106, %104 : vector<16x16xf32>
    %108 = arith.addf %103, %107 : vector<16x16xf32>
    %109 = vector.extract_strided_slice %98 {offsets = [0, 2], sizes = [16, 16], strides = [1, 1]} : vector<16x18xf32> to vector<16x16xf32>
    %c17 = arith.constant 17 : index
    %110 = memref.load %arg2[%c17] : memref<36xf32, #tpu.memory_space<smem>>
    %111 = vector.broadcast %110 : f32 to vector<16x16xf32>
    %112 = arith.mulf %111, %109 : vector<16x16xf32>
    %113 = arith.addf %108, %112 : vector<16x16xf32>
    %c1_33 = arith.constant 1 : index
    %c0_34 = arith.constant 0 : index
    %c0_35 = arith.constant 0 : index
    %114 = vector.load %arg8[%c1_33, %c0_34, %c0_35] : memref<4x16x16xf32, #tpu.memory_space<vmem>>, vector<1x16x16xf32>
    %115 = vector.shape_cast %114 : vector<1x16x16xf32> to vector<16x16xf32>
    %116 = vector.shape_cast %113 : vector<16x16xf32> to vector<1x16x16xf32>
    tpu.vector_store %arg8[%c1_33, %c0_34, %c0_35], %116 {strides = array<i32>} : memref<4x16x16xf32, #tpu.memory_space<vmem>>, vector<1x16x16xf32>,
    %c2_36 = arith.constant 2 : index
    %117 = memref.load %arg3[%c2_36] : memref<4xf32, #tpu.memory_space<smem>>
    %118 = vector.broadcast %117 : f32 to vector<16x16xf32>
    %c2_37 = arith.constant 2 : index
    %c0_38 = arith.constant 0 : index
    %c0_39 = arith.constant 0 : index
    %119 = vector.load %arg7[%c2_37, %c0_38, %c0_39] : memref<4x18x18xf32, #tpu.memory_space<vmem>>, vector<1x16x18xf32>
    %120 = vector.shape_cast %119 : vector<1x16x18xf32> to vector<16x18xf32>
    %121 = vector.extract_strided_slice %120 {offsets = [0, 0], sizes = [16, 16], strides = [1, 1]} : vector<16x18xf32> to vector<16x16xf32>
    %c18 = arith.constant 18 : index
    %122 = memref.load %arg2[%c18] : memref<36xf32, #tpu.memory_space<smem>>
    %123 = vector.broadcast %122 : f32 to vector<16x16xf32>
    %124 = arith.mulf %123, %121 : vector<16x16xf32>
    %125 = arith.addf %118, %124 : vector<16x16xf32>
    %126 = vector.extract_strided_slice %120 {offsets = [0, 1], sizes = [16, 16], strides = [1, 1]} : vector<16x18xf32> to vector<16x16xf32>
    %c19 = arith.constant 19 : index
    %127 = memref.load %arg2[%c19] : memref<36xf32, #tpu.memory_space<smem>>
    %128 = vector.broadcast %127 : f32 to vector<16x16xf32>
    %129 = arith.mulf %128, %126 : vector<16x16xf32>
    %130 = arith.addf %125, %129 : vector<16x16xf32>
    %131 = vector.extract_strided_slice %120 {offsets = [0, 2], sizes = [16, 16], strides = [1, 1]} : vector<16x18xf32> to vector<16x16xf32>
    %c20 = arith.constant 20 : index
    %132 = memref.load %arg2[%c20] : memref<36xf32, #tpu.memory_space<smem>>
    %133 = vector.broadcast %132 : f32 to vector<16x16xf32>
    %134 = arith.mulf %133, %131 : vector<16x16xf32>
    %135 = arith.addf %130, %134 : vector<16x16xf32>
    %c2_40 = arith.constant 2 : index
    %c1_41 = arith.constant 1 : index
    %c0_42 = arith.constant 0 : index
    %136 = vector.load %arg7[%c2_40, %c1_41, %c0_42] : memref<4x18x18xf32, #tpu.memory_space<vmem>>, vector<1x16x18xf32>
    %137 = vector.shape_cast %136 : vector<1x16x18xf32> to vector<16x18xf32>
    %138 = vector.extract_strided_slice %137 {offsets = [0, 0], sizes = [16, 16], strides = [1, 1]} : vector<16x18xf32> to vector<16x16xf32>
    %c21 = arith.constant 21 : index
    %139 = memref.load %arg2[%c21] : memref<36xf32, #tpu.memory_space<smem>>
    %140 = vector.broadcast %139 : f32 to vector<16x16xf32>
    %141 = arith.mulf %140, %138 : vector<16x16xf32>
    %142 = arith.addf %135, %141 : vector<16x16xf32>
    %143 = vector.extract_strided_slice %137 {offsets = [0, 1], sizes = [16, 16], strides = [1, 1]} : vector<16x18xf32> to vector<16x16xf32>
    %c22 = arith.constant 22 : index
    %144 = memref.load %arg2[%c22] : memref<36xf32, #tpu.memory_space<smem>>
    %145 = vector.broadcast %144 : f32 to vector<16x16xf32>
    %146 = arith.mulf %145, %143 : vector<16x16xf32>
    %147 = arith.addf %142, %146 : vector<16x16xf32>
    %148 = vector.extract_strided_slice %137 {offsets = [0, 2], sizes = [16, 16], strides = [1, 1]} : vector<16x18xf32> to vector<16x16xf32>
    %c23 = arith.constant 23 : index
    %149 = memref.load %arg2[%c23] : memref<36xf32, #tpu.memory_space<smem>>
    %150 = vector.broadcast %149 : f32 to vector<16x16xf32>
    %151 = arith.mulf %150, %148 : vector<16x16xf32>
    %152 = arith.addf %147, %151 : vector<16x16xf32>
    %c2_43 = arith.constant 2 : index
    %c2_44 = arith.constant 2 : index
    %c0_45 = arith.constant 0 : index
    %153 = vector.load %arg7[%c2_43, %c2_44, %c0_45] : memref<4x18x18xf32, #tpu.memory_space<vmem>>, vector<1x16x18xf32>
    %154 = vector.shape_cast %153 : vector<1x16x18xf32> to vector<16x18xf32>
    %155 = vector.extract_strided_slice %154 {offsets = [0, 0], sizes = [16, 16], strides = [1, 1]} : vector<16x18xf32> to vector<16x16xf32>
    %c24 = arith.constant 24 : index
    %156 = memref.load %arg2[%c24] : memref<36xf32, #tpu.memory_space<smem>>
    %157 = vector.broadcast %156 : f32 to vector<16x16xf32>
    %158 = arith.mulf %157, %155 : vector<16x16xf32>
    %159 = arith.addf %152, %158 : vector<16x16xf32>
    %160 = vector.extract_strided_slice %154 {offsets = [0, 1], sizes = [16, 16], strides = [1, 1]} : vector<16x18xf32> to vector<16x16xf32>
    %c25 = arith.constant 25 : index
    %161 = memref.load %arg2[%c25] : memref<36xf32, #tpu.memory_space<smem>>
    %162 = vector.broadcast %161 : f32 to vector<16x16xf32>
    %163 = arith.mulf %162, %160 : vector<16x16xf32>
    %164 = arith.addf %159, %163 : vector<16x16xf32>
    %165 = vector.extract_strided_slice %154 {offsets = [0, 2], sizes = [16, 16], strides = [1, 1]} : vector<16x18xf32> to vector<16x16xf32>
    %c26 = arith.constant 26 : index
    %166 = memref.load %arg2[%c26] : memref<36xf32, #tpu.memory_space<smem>>
    %167 = vector.broadcast %166 : f32 to vector<16x16xf32>
    %168 = arith.mulf %167, %165 : vector<16x16xf32>
    %169 = arith.addf %164, %168 : vector<16x16xf32>
    %c2_46 = arith.constant 2 : index
    %c0_47 = arith.constant 0 : index
    %c0_48 = arith.constant 0 : index
    %170 = vector.load %arg8[%c2_46, %c0_47, %c0_48] : memref<4x16x16xf32, #tpu.memory_space<vmem>>, vector<1x16x16xf32>
    %171 = vector.shape_cast %170 : vector<1x16x16xf32> to vector<16x16xf32>
    %172 = vector.shape_cast %169 : vector<16x16xf32> to vector<1x16x16xf32>
    tpu.vector_store %arg8[%c2_46, %c0_47, %c0_48], %172 {strides = array<i32>} : memref<4x16x16xf32, #tpu.memory_space<vmem>>, vector<1x16x16xf32>,
    %c3_49 = arith.constant 3 : index
    %173 = memref.load %arg3[%c3_49] : memref<4xf32, #tpu.memory_space<smem>>
    %174 = vector.broadcast %173 : f32 to vector<16x16xf32>
    %c3_50 = arith.constant 3 : index
    %c0_51 = arith.constant 0 : index
    %c0_52 = arith.constant 0 : index
    %175 = vector.load %arg7[%c3_50, %c0_51, %c0_52] : memref<4x18x18xf32, #tpu.memory_space<vmem>>, vector<1x16x18xf32>
    %176 = vector.shape_cast %175 : vector<1x16x18xf32> to vector<16x18xf32>
    %177 = vector.extract_strided_slice %176 {offsets = [0, 0], sizes = [16, 16], strides = [1, 1]} : vector<16x18xf32> to vector<16x16xf32>
    %c27 = arith.constant 27 : index
    %178 = memref.load %arg2[%c27] : memref<36xf32, #tpu.memory_space<smem>>
    %179 = vector.broadcast %178 : f32 to vector<16x16xf32>
    %180 = arith.mulf %179, %177 : vector<16x16xf32>
    %181 = arith.addf %174, %180 : vector<16x16xf32>
    %182 = vector.extract_strided_slice %176 {offsets = [0, 1], sizes = [16, 16], strides = [1, 1]} : vector<16x18xf32> to vector<16x16xf32>
    %c28 = arith.constant 28 : index
    %183 = memref.load %arg2[%c28] : memref<36xf32, #tpu.memory_space<smem>>
    %184 = vector.broadcast %183 : f32 to vector<16x16xf32>
    %185 = arith.mulf %184, %182 : vector<16x16xf32>
    %186 = arith.addf %181, %185 : vector<16x16xf32>
    %187 = vector.extract_strided_slice %176 {offsets = [0, 2], sizes = [16, 16], strides = [1, 1]} : vector<16x18xf32> to vector<16x16xf32>
    %c29 = arith.constant 29 : index
    %188 = memref.load %arg2[%c29] : memref<36xf32, #tpu.memory_space<smem>>
    %189 = vector.broadcast %188 : f32 to vector<16x16xf32>
    %190 = arith.mulf %189, %187 : vector<16x16xf32>
    %191 = arith.addf %186, %190 : vector<16x16xf32>
    %c3_53 = arith.constant 3 : index
    %c1_54 = arith.constant 1 : index
    %c0_55 = arith.constant 0 : index
    %192 = vector.load %arg7[%c3_53, %c1_54, %c0_55] : memref<4x18x18xf32, #tpu.memory_space<vmem>>, vector<1x16x18xf32>
    %193 = vector.shape_cast %192 : vector<1x16x18xf32> to vector<16x18xf32>
    %194 = vector.extract_strided_slice %193 {offsets = [0, 0], sizes = [16, 16], strides = [1, 1]} : vector<16x18xf32> to vector<16x16xf32>
    %c30 = arith.constant 30 : index
    %195 = memref.load %arg2[%c30] : memref<36xf32, #tpu.memory_space<smem>>
    %196 = vector.broadcast %195 : f32 to vector<16x16xf32>
    %197 = arith.mulf %196, %194 : vector<16x16xf32>
    %198 = arith.addf %191, %197 : vector<16x16xf32>
    %199 = vector.extract_strided_slice %193 {offsets = [0, 1], sizes = [16, 16], strides = [1, 1]} : vector<16x18xf32> to vector<16x16xf32>
    %c31 = arith.constant 31 : index
    %200 = memref.load %arg2[%c31] : memref<36xf32, #tpu.memory_space<smem>>
    %201 = vector.broadcast %200 : f32 to vector<16x16xf32>
    %202 = arith.mulf %201, %199 : vector<16x16xf32>
    %203 = arith.addf %198, %202 : vector<16x16xf32>
    %204 = vector.extract_strided_slice %193 {offsets = [0, 2], sizes = [16, 16], strides = [1, 1]} : vector<16x18xf32> to vector<16x16xf32>
    %c32 = arith.constant 32 : index
    %205 = memref.load %arg2[%c32] : memref<36xf32, #tpu.memory_space<smem>>
    %206 = vector.broadcast %205 : f32 to vector<16x16xf32>
    %207 = arith.mulf %206, %204 : vector<16x16xf32>
    %208 = arith.addf %203, %207 : vector<16x16xf32>
    %c3_56 = arith.constant 3 : index
    %c2_57 = arith.constant 2 : index
    %c0_58 = arith.constant 0 : index
    %209 = vector.load %arg7[%c3_56, %c2_57, %c0_58] : memref<4x18x18xf32, #tpu.memory_space<vmem>>, vector<1x16x18xf32>
    %210 = vector.shape_cast %209 : vector<1x16x18xf32> to vector<16x18xf32>
    %211 = vector.extract_strided_slice %210 {offsets = [0, 0], sizes = [16, 16], strides = [1, 1]} : vector<16x18xf32> to vector<16x16xf32>
    %c33 = arith.constant 33 : index
    %212 = memref.load %arg2[%c33] : memref<36xf32, #tpu.memory_space<smem>>
    %213 = vector.broadcast %212 : f32 to vector<16x16xf32>
    %214 = arith.mulf %213, %211 : vector<16x16xf32>
    %215 = arith.addf %208, %214 : vector<16x16xf32>
    %216 = vector.extract_strided_slice %210 {offsets = [0, 1], sizes = [16, 16], strides = [1, 1]} : vector<16x18xf32> to vector<16x16xf32>
    %c34 = arith.constant 34 : index
    %217 = memref.load %arg2[%c34] : memref<36xf32, #tpu.memory_space<smem>>
    %218 = vector.broadcast %217 : f32 to vector<16x16xf32>
    %219 = arith.mulf %218, %216 : vector<16x16xf32>
    %220 = arith.addf %215, %219 : vector<16x16xf32>
    %221 = vector.extract_strided_slice %210 {offsets = [0, 2], sizes = [16, 16], strides = [1, 1]} : vector<16x18xf32> to vector<16x16xf32>
    %c35 = arith.constant 35 : index
    %222 = memref.load %arg2[%c35] : memref<36xf32, #tpu.memory_space<smem>>
    %223 = vector.broadcast %222 : f32 to vector<16x16xf32>
    %224 = arith.mulf %223, %221 : vector<16x16xf32>
    %225 = arith.addf %220, %224 : vector<16x16xf32>
    %c3_59 = arith.constant 3 : index
    %c0_60 = arith.constant 0 : index
    %c0_61 = arith.constant 0 : index
    %226 = vector.load %arg8[%c3_59, %c0_60, %c0_61] : memref<4x16x16xf32, #tpu.memory_space<vmem>>, vector<1x16x16xf32>
    %227 = vector.shape_cast %226 : vector<1x16x16xf32> to vector<16x16xf32>
    %228 = vector.shape_cast %225 : vector<16x16xf32> to vector<1x16x16xf32>
    tpu.vector_store %arg8[%c3_59, %c0_60, %c0_61], %228 {strides = array<i32>} : memref<4x16x16xf32, #tpu.memory_space<vmem>>, vector<1x16x16xf32>,
    %c0_62 = arith.constant 0 : index
    %c0_63 = arith.constant 0 : index
    %c0_64 = arith.constant 0 : index
    %229 = vector.load %arg8[%c0_62, %c0_63, %c0_64] : memref<4x16x16xf32, #tpu.memory_space<vmem>>, vector<4x16x16xf32>
    %230 = vector.shape_cast %229 : vector<4x16x16xf32> to vector<4x256xf32>
    %c0_65 = arith.constant 0 : index
    %c0_66 = arith.constant 0 : index
    %231 = vector.load %arg4[%c0_65, %c0_66] : memref<8x4xf32, #tpu.memory_space<vmem>>, vector<8x4xf32>
    %cst_67 = arith.constant dense<0.000000e+00> : vector<8x256xf32>
    %232 = tpu.matmul %231, %230, %cst_67 {dimension_numbers = #tpu.dot_dimension_numbers<[1], [0], [0], [1], [0, 0, 1, 1], [], []>} : vector<8x4xf32>, vector<4x256xf32>, vector<8x256xf32> -> vector<8x256xf32>
    %c0_68 = arith.constant 0 : index
    %c0_69 = arith.constant 0 : index
    %233 = vector.load %arg5[%c0_68, %c0_69] : memref<8x1xf32, #tpu.memory_space<vmem>>, vector<8x1xf32>
    %234 = vector.broadcast %233 : vector<8x1xf32> to vector<8x256xf32>
    %235 = arith.addf %232, %234 : vector<8x256xf32>
    %c0_70 = arith.constant 0 : index
    %c0_71 = arith.constant 0 : index
    %c0_72 = arith.constant 0 : index
    %236 = vector.load %arg6[%c0_70, %c0_71, %c0_72] : memref<1x8x256xf32, #tpu.memory_space<vmem>>, vector<1x8x256xf32>
    %237 = vector.shape_cast %236 : vector<1x8x256xf32> to vector<8x256xf32>
    %238 = vector.shape_cast %235 : vector<8x256xf32> to vector<1x8x256xf32>
    tpu.vector_store %arg6[%c0_70, %c0_71, %c0_72], %238 {strides = array<i32>} : memref<1x8x256xf32, #tpu.memory_space<vmem>>, vector<1x8x256xf32>,
    return
  }
  func.func @transform_0(%arg0: i32) -> (i32, i32, i32, i32) {
    %c0_i32 = arith.constant 0 : i32
    %c0_i32_0 = arith.constant 0 : i32
    %c0_i32_1 = arith.constant 0 : i32
    %c0_i32_2 = arith.constant 0 : i32
    return %arg0, %c0_i32, %c0_i32_0, %c0_i32_1 : i32, i32, i32, i32
  }
  func.func @transform_1(%arg0: i32) -> i32 {
    %c0_i32 = arith.constant 0 : i32
    %c0_i32_0 = arith.constant 0 : i32
    return %c0_i32 : i32
  }
  func.func @transform_2(%arg0: i32) -> i32 {
    %c0_i32 = arith.constant 0 : i32
    %c0_i32_0 = arith.constant 0 : i32
    return %c0_i32 : i32
  }
  func.func @transform_3(%arg0: i32) -> (i32, i32) {
    %c0_i32 = arith.constant 0 : i32
    %c0_i32_0 = arith.constant 0 : i32
    %c0_i32_1 = arith.constant 0 : i32
    return %c0_i32, %c0_i32_0 : i32, i32
  }
  func.func @transform_4(%arg0: i32) -> (i32, i32) {
    %c0_i32 = arith.constant 0 : i32
    %c0_i32_0 = arith.constant 0 : i32
    %c0_i32_1 = arith.constant 0 : i32
    return %c0_i32, %c0_i32_0 : i32, i32
  }
  func.func @transform_5(%arg0: i32) -> (i32, i32, i32) {
    %c0_i32 = arith.constant 0 : i32
    %c0_i32_0 = arith.constant 0 : i32
    %c0_i32_1 = arith.constant 0 : i32
    return %arg0, %c0_i32, %c0_i32_0 : i32, i32, i32
  }
}

</mosaic_0001>

<bundles_post_ra>
// kernel: tpu_custom_call.1
= control target key start
LH: loop header
LB: loop body
LE: loop exit
PB: predicated region body
PF: predicated region fallthrough
CT: control target
= control target key end

     0   :  { %s1956_s0 = inlined_call_operand.hbm [shape: f32[2,4,16,16], index: 0, kind: input, shape index: {}]   ;;  %s1957_s1 = inlined_call_operand.vmem [shape: f32[36], index: 1, kind: input, shape index: {}]   ;;  %s1958_s2 = inlined_call_operand.vmem [shape: f32[4], index: 2, kind: input, shape index: {}]   ;;  %s1959_s3 = inlined_call_operand.vmem [shape: f32[8,4], index: 3, kind: input, shape index: {}]   ;;  %s1960_s4 = inlined_call_operand.vmem [shape: f32[8,1], index: 4, kind: input, shape index: {}]   ;;  %s1961_s5 = inlined_call_operand.hbm [shape: f32[2,8,256], index: 5, kind: output, shape index: {}]  }
   0x1   :  { %1962 = sst [smem:[#allocation17_spill]] %s1957_s1 }
   0x2   :  { %1963 = sst [smem:[#allocation18_spill]] %s1958_s2 }
   0x3   :  { %10 = vsyncpa [#allocation5], 0 }
   0x4   :  { %12 = vsyncpa [#allocation5 + $0x1], 0 }
   0x5   :  { %13 = vsyncpa [#allocation7], 0 }
   0x6   :  { %14 = vsyncpa [#allocation10], 0 }
   0x7   :  { %15 = vsyncpa [#allocation6], 0 }
   0x8   :  { %17 = vsyncpa [#allocation6 + $0x1], 0  ;;  %s1487_s18 = smov 0   ;;  %s1489_s19 = smov 0  }
   0x9   :  { %s1491_s20 = smov 0   ;;  %s1493_s21 = smov 0  }
   0xa LB: > { %s1508_s22 = sadd.s32 4294967295, %s1437_s21   ;;  %s1156_s23 = sadd.s32 4294967294, %s1437_s21   ;;  %s1437_s21 = sphi %s1493_s21, %s1978_s21   ;;  %s1433_s20 = sphi %s1491_s20, %s1977_s20   ;;  %s1429_s19 = sphi %s1489_s19, %s1976_s19   ;;  %s1425_s18 = sphi %s1487_s18, %s1975_s18  }
   0xb   : > { %s1512_s24 = sadd.s32 1, %s1437_s21   ;;  %s30_s25 = sadd.s32 1, %s1433_s20 }
   0xc   : > { %s27_s26 = ssub.s32 %s1437_s21, %s1512_s24  ;;  %p37_p0 = scmp.ne.s32.totalorder %s1433_s20, %s1429_s19 }
   0xd   : > { %p28_p1 = scmp.eq.s32.totalorder %s27_s26, 0  ;;  %p38_p2 = scmp.eq.s32.totalorder %s1437_s21, 0 }
   0xe   : > { %p43_p3 = scmp.ne.s32.totalorder %s1429_s19, %s1425_s18  ;;  %p44_p4 = scmp.eq.s32.totalorder %s1508_s22, 0 }
   0xf   : > { %s1524_s27 = scalar_select %p28_p1, %s1433_s20, %s30_s25  }
  0x10   : > { %p1526_p5 = por %p38_p2, %p37_p0  ;;  %p1532_p6 = por %p44_p4, %p43_p3 }
  0x11   : > { %1964 = sst [smem:[#allocation16_spill]] %s1524_s27  ;;  %p151_p7 = scmp.eq.s32.totalorder %s1508_s22, 1 }
  0x12   : > { %p157_p8 = scmp.eq.s32.totalorder %s1156_s23, 1  ;;  %p1157_p9 = scmp.ge.s32.totalorder %s1437_s21, 1 }
  0x13   : > { %p164_p10 = scmp.lt.s32.totalorder %s1437_s21, 3  ;;  %p1539_p11 = por %p151_p7, %p37_p0 }
  0x14   : > { %p1543_p12 = por %p157_p8, %p43_p3  ;;  %s1970_s1 = sld [smem:[#allocation17_spill]] }
  0x15   : > { %p1547_p13 = pnand %p1157_p9, %p164_p10  ;;  %p1247_p2 = scmp.lt.s32.totalorder %s1437_s21, 2 }
  0x16   : > { %s1971_s2 = sld [smem:[#allocation18_spill]]  ;;  %s1439_s15 = smov [#allocation8]  }
  0x17   : > { %p1230_p1 = pneg %p1547_p13  ;;  %p1565_p7 = pnand %p1247_p2, %p1526_p5 }
  0x18   : > { %s203_s16 = sand.u32 1, %s1433_s20   ;;  %s1440_s17 = smov [#allocation9]  }
  0x19   : > { %p1231_p3 = pnand %p1230_p1, %p44_p4  ;;  %s1161_s23 = sshll.u32 %s203_s16, 6 }
  0x1a   : > { %s176_s10 = sshll.u32 %s1970_s1, 4  ;;  %s1216_s25 = sshll.u32 %s1437_s21, 6  ;;  %s177_s10 = int_to_ptr.vmem [resolvable:$true] %s176_s10 }
  0x1b   : > { %1233 = dma.vmem_to_smem (!%p1231_p3), %s177_s10, 16, %s1439_s15, [#allocation7]  }
  0x1c   : > { %s186_s13 = sshll.u32 %s1971_s2, 4  ;;  %s212_s9 = scalar_lea.hbm %s1956_s0, %s1216_s25  ;;  %s187_s13 = int_to_ptr.vmem [resolvable:$true] %s186_s13 }
  0x1d   : > { %1236 = dma.vmem_to_smem (!%p1231_p3), %s187_s13, 16, %s1440_s17, [#allocation10]  }
  0x1e   : > { %s207_s11 = scalar_lea.vmem [#allocation4], %s1161_s23  ;;  %s213_s28 = sshll.u32 %s212_s9, 4  ;;  %s214_s28 = int_to_ptr.hbm [resolvable:$true] %s213_s28 }
  0x1f   : > { %s215_s12 = sshll.u32 %s207_s11, 4  ;;  %s204_s1 = scalar_lea.sflag [#allocation5], %s203_s16  ;;  %s216_s12 = int_to_ptr.vmem [resolvable:$true] %s215_s12 }
  0x20   : > { %s1333_s2 = sshra.s32 %s214_s28, 4  ;;  %p1337_p8 = pneg %p1565_p7  ;;  %s1334_s2 = int_to_ptr.hbm [resolvable:$true] %s1333_s2 }
  0x21   : > { %s1335_s27 = scalar_lea.hbm %s1334_s2, 64  ;;  %s1340_s15 = scalar_lea.hbm %s1956_s0, 128 }
  0x22   : > { %p1336_p5 = scmp.ne.s32.totalorder %s1334_s2, %s1335_s27  ;;  %p1341_p1 = scmp.lt.s32.totalorder %s1334_s2, %s1956_s0 }
  0x23   : > { %p1342_p2 = scmp.lt.s32.totalorder %s1340_s15, %s1335_s27 }
  0x24   : > { %p1338_p9 = pnand %p1337_p8, %p1336_p5 }
  0x25   : > { %p1343_p3 = por %p1342_p2, %p1341_p1 }
  0x26   : > { %p1339_p10 = pneg %p1338_p9 }
  0x28   : > { %p1344_p0 = pnand %p1343_p3, %p1339_p10 }
  0x2a   : > { %1347 = shalt.err (!%p1344_p0)
}
  0x2b   : > { %s1441_s16 = smov 128   ;;  %s1442_s23 = smov 8  }
  0x2c   : > { %1240 = dma.hbm_to_vmem [thread:$0]  (!%p1565_p7), %s214_s28, 1024, %s216_s12, %s204_s1, %s1441_s16, %s1441_s16, %s1442_s23  }
  0x2d   : > { %227 = sbr.rel (%p1547_p13) target bundleno = 718 (0x2ce), region = 40  ;;  %s1587_s26 = sand.u32 (!%p1547_p13), 1, %s1429_s19  }
  0x2e   : > { %s1165_s8 = sshll.u32 (!%p1547_p13), %s1587_s26, 6  ;;  %s230_s2 = scalar_lea.sflag (!%p1547_p13), [#allocation5], %s1587_s26 }
  0x2f   : > { %s233_s27 = scalar_lea.vmem (!%p1547_p13), [#allocation4], %s1165_s8 }
  0x32   : > { %1408 = dma.done.wait (%p1532_p6), %s230_s2, 1024  }
  0x33   : > { %1410 = vsyncadd (%p1532_p6), %s230_s2, 4294966272 }
  0x34   : > { %1412 = dma.done.wait (%p44_p4), [#allocation7], 16  }
  0x35   : > { %1414 = vsyncadd (%p44_p4), [#allocation7], 4294967280 }
  0x36   : > { %1416 = dma.done.wait (%p44_p4), [#allocation10], 16  }
  0x37   : > { %1418 = vsyncadd (%p44_p4), [#allocation10], 4294967280 }
  0x38   : > { %249 = sfence }
  0x39   : > { %v292_v0 = vld [vmem:[%s233_s27 + $0x30] sm:$0xff]  ;;  %s1443_s1 = smov 1   ;;  %v290_v2 = vld [vmem:[%s233_s27 + $0x20] sm:$0xff]  ;;  %v293_v3 = vld [vmem:[%s233_s27 + $0x38] sm:$0xff]  ;;  %vm272_vm0 = vcmask 146432   ;;  %v1444_v8 = vmov 0.0  }
  0x3a   : > { %v288_v1 = vld [vmem:[%s233_s27 + $0x10] sm:$0xff]  ;;  %314 = vrot.lane.b32.xlu0 %v292_v0, %s1443_s1  ;;  %310 = vrot.lane.b32.xlu2 %v290_v2, %s1443_s1  ;;  %v289_v4 = vld [vmem:[%s233_s27 + $0x18] sm:$0xff]  ;;  %280 = vst.msk [vmem:[#allocation2 + $0x30] sm:$0xff] %vm272_vm0, %v1444_v8  ;;  %vm275_vm1 = vcmask 140288   ;;  %vm326_vm2 = vcmask 138248   ;;  %s1199_s29 = sld [smem:[#allocation8 + $0x1c]] }
  0x3b   : > { %306 = vrot.lane.b32.xlu1 %v288_v1, %s1443_s1  ;;  %v291_v5 = vld [vmem:[%s233_s27 + $0x28] sm:$0xff]  ;;  %v286_v6 = vld [vmem:[%s233_s27] sm:$0xff]  ;;  %281 = vst.msk [vmem:[#allocation2 + $0x38] sm:$0xff] %vm272_vm0, %v1444_v8  ;;  %s1179_s7 = sld [smem:[#allocation8 + $0xa]]  ;;  %s1445_s9 = smov 127   ;;  %vm445_vm3 = vcmask 130048  }
  0x3c   : > { %v287_v7 = vld [vmem:[%s233_s27 + $0x8] sm:$0xff]  ;;  %273 = vst.msk [vmem:[#allocation2] sm:$0xff] %vm272_vm0, %v1444_v8  ;;  %s1607_s14 = sld [smem:[#allocation8 + $0x13]]  ;;  %s1446_s10 = smov 126   ;;  %vm799_vm4 = vcmask 1047556   ;;  %vm968_vm5 = vcmask 261120  }
  0x3d   : > { %274 = vst.msk [vmem:[#allocation2 + $0x8] sm:$0xff] %vm272_vm0, %v1444_v8  ;;  %s1619_s11 = sld [smem:[#allocation8 + $0x1]]  ;;  %vm970_vm6 = vcmask 392192   ;;  %vm972_vm7 = vcmask 523264   ;;  %vm976_vm8 = vcmask 785408   ;;  %vm974_vm9 = vcmask 654336  }
  0x3e   : > { %277 = vst.msk [vmem:[#allocation2 + $0x18] sm:$0xff] %vm272_vm0, %v1444_v8  ;;  %s1200_s12 = sld [smem:[#allocation8 + $0x1d]]  ;;  %vm978_vm10 = vcmask 916480   ;;  %vm998_vm11 = vcmask 1043456   ;;  %vm994_vm12 = vcmask 31744  }
  0x3f   : > { %278 = vst.msk [vmem:[#allocation2 + $0x20] sm:$0xff] %vm272_vm0, %v1444_v8  ;;  %s1180_s28 = sld [smem:[#allocation8 + $0xb]] }
  0x40   : > { %283 = vst.msk [vmem:[#allocation2 + $0x48] sm:$0xff] %vm272_vm0, %v1444_v8  ;;  %v688_v13 = vstv %s1199_s29  ;;  %s1190_s13 = sld [smem:[#allocation8 + $0x14]] }
  0x41   : > { %284 = vst.msk [vmem:[#allocation2 + $0x50] sm:$0xff] %vm272_vm0, %v1444_v8  ;;  %v460_v14 = vstv %s1179_s7  ;;  %s1170_s15 = sld [smem:[#allocation8 + $0x2]] }
  0x42   : > { %316 = vrot.lane.b32.xlu0 %v293_v3, %s1443_s1  ;;  %312 = vrot.lane.b32.xlu2 %v291_v5, %s1443_s1  ;;  %282 = vst.msk [vmem:[#allocation2 + $0x40] sm:$0x3] %vm275_vm1, %v1444_v8  ;;  %v574_v22 = vstv %s1607_s14  ;;  %s1202_s17 = sld [smem:[#allocation8 + $0x1f]] }
  0x43   : > { %308 = vrot.lane.b32.xlu1 %v289_v4, %s1443_s1  ;;  %276 = vst.msk [vmem:[#allocation2 + $0x10] sm:$0x3] %vm275_vm1, %v1444_v8  ;;  %v346_v31 = vstv %s1619_s11  ;;  %s1182_s25 = sld [smem:[#allocation8 + $0xd]] }
  0x44   : > { %279 = vst.msk [vmem:[#allocation2 + $0x28] sm:$0x3] %vm275_vm1, %v1444_v8  ;;  %v702_v32 = vstv %s1200_s12  ;;  %s1192_s16 = sld [smem:[#allocation8 + $0x16]] }
  0x45   : > { %285 = vst.msk [vmem:[#allocation2 + $0x58] sm:$0x3] %vm275_vm1, %v1444_v8  ;;  %v474_v39 = vstv %s1180_s28  ;;  %s1203_s23 = sld [smem:[#allocation8 + $0x20]] }
  0x46   : > { %v588_v42 = vstv %s1190_s13  ;;  %s1172_s8 = sld [smem:[#allocation8 + $0x4]] }
  0x47   : > { %v360_v43 = vstv %s1170_s15  ;;  %s1183_s2 = sld [smem:[#allocation8 + $0xe]] }
  0x48   : > { %v724_v49 = vstv %s1202_s17  ;;  %s1193_s27 = sld [smem:[#allocation8 + $0x17]] }
  0x49   : > { %v496_v54 = vstv %s1182_s25  ;;  %s1701_s29 = sld [smem:[#allocation8 + $0x22]] }
  0x4a   : > { %302 = vrot.lane.b32.xlu0 %v286_v6, %s1443_s1  ;;  %v610_v56 = vstv %s1192_s16  ;;  %s1709_s7 = sld [smem:[#allocation8 + $0x1b]] }
  0x4b   : > { %304 = vrot.lane.b32.xlu1 %v287_v7, %s1443_s1  ;;  %v738_v63 = vstv %s1203_s23  ;;  %s1173_s1 = sld [smem:[#allocation8 + $0x5]] }
  0x4c   : > { %v382_v3 = vstv %s1172_s8  ;;  %s1714_s14 = sld [smem:[#allocation8 + $0x10]] }
  0x4d   : > { %v510_v4 = vstv %s1183_s2  ;;  %s1717_s11 = sld [smem:[#allocation9 + $0x3]] }
  0x4e   : > { %s1725_s12 = sld [smem:[#allocation8 + $0x19]] }
  0x4f   : > { %s1731_s28 = sld [smem:[#allocation8 + $0x23]] }
  0x50   : > { %s1736_s13 = sld [smem:[#allocation8 + $0x9]] }
  0x51   : > { %s1748_s15 = sld [smem:[#allocation9 + $0x1]] }
  0x52   : > { %s1759_s17 = sld [smem:[#allocation8 + $0x7]] }
  0x53   : > { %s1767_s25 = sld [smem:[#allocation8 + $0x1e]] }
  0x54   : > { %s1769_s16 = sld [smem:[#allocation8 + $0x11]] }
  0x55   : > { %s1773_s23 = sld [smem:[#allocation8]] }
  0x56   : > { %s1779_s8 = sld [smem:[#allocation8 + $0x1a]] }
  0x57   : > { %s1785_s2 = sld [smem:[#allocation9]] }
  0x94   : > { %v311_v9 = vpop.permute.xlu2 %310 }
  0x95   : > { %331 = vst.msk [vmem:[#allocation2 + $0x31] sm:$0xff] %vm326_vm2, %v311_v9 }
  0x9c   : > { %v313_v10 = vpop.permute.xlu2 %312  ;;  %v1636_v30 = vld [vmem:[#allocation2 + $0x30] sm:$0xff] }
  0x9d   : > { %332 = vst.msk [vmem:[#allocation2 + $0x39] sm:$0xff] %vm326_vm2, %v313_v10  ;;  %v575_v34 = vmul.f32 %v574_v22, %v1636_v30  ;;  %v589_v45 = vmul.f32 %v588_v42, %v1636_v30  ;;  %v1673_v55 = vld [vmem:[#allocation2 + $0x31] sm:$0xff]  ;;  %v624_v10 = vstv %s1193_s27  ;;  %s1794_s27 = sld [smem:[#allocation8 + $0x12]] }
  0x9e   : > { %v611_v59 = vmul.f32 %v610_v56, %v1673_v55 }
  0xa4   : > { %v1621_v21 = vld [vmem:[#allocation2 + $0x38] sm:$0xff] }
  0xa5   : > { %v576_v29 = vmul.f32 %v574_v22, %v1621_v21  ;;  %v590_v48 = vmul.f32 %v588_v42, %v1621_v21  ;;  %v1683_v61 = vld [vmem:[#allocation2 + $0x39] sm:$0xff]  ;;  %v682_v22 = vstv %s1709_s7  ;;  %v454_v42 = vstv %s1736_s13  ;;  %s1855_s7 = sld [smem:[#allocation8 + $0x6]]  ;;  %s1449_s13 = smov 32  }
  0xa6   : > { %v612_v0 = vmul.f32 %v610_v56, %v1683_v61 }
  0xac   : > { %v315_v11 = vpop.permute.xlu0 %314 }
  0xad   : > { %v307_v12 = vpop.permute.xlu1 %306  ;;  %333 = vst.msk [vmem:[#allocation2 + $0x49] sm:$0xff] %vm326_vm2, %v315_v11 }
  0xae   : > { %329 = vst.msk [vmem:[#allocation2 + $0x19] sm:$0xff] %vm326_vm2, %v307_v12  ;;  %v626_v12 = vmul.f32 %v624_v10, %v1683_v61 }
  0xb4   : > { %v317_v15 = vpop.permute.xlu0 %316  ;;  %v1609_v17 = vld [vmem:[#allocation2 + $0x48] sm:$0xff] }
  0xb5   : > { %v309_v16 = vpop.permute.xlu1 %308  ;;  %334 = vst.msk [vmem:[#allocation2 + $0x51] sm:$0xff] %vm326_vm2, %v317_v15  ;;  %v689_v18 = vmul.f32 %v688_v13, %v1609_v17  ;;  %v1613_v19 = vld [vmem:[#allocation2 + $0x18] sm:$0xff]  ;;  %v703_v36 = vmul.f32 %v702_v32, %v1609_v17  ;;  %v1669_v52 = vld [vmem:[#allocation2 + $0x49] sm:$0xff]  ;;  %v760_v15 = vstv %s1701_s29  ;;  %s1811_s29 = sld [smem:[#allocation9 + $0x2]] }
  0xb6   : > { %330 = vst.msk [vmem:[#allocation2 + $0x21] sm:$0xff] %vm326_vm2, %v309_v16  ;;  %v461_v20 = vmul.f32 %v460_v14, %v1613_v19  ;;  %v475_v44 = vmul.f32 %v474_v39, %v1613_v19  ;;  %v1671_v53 = vld [vmem:[#allocation2 + $0x19] sm:$0xff]  ;;  %v725_v57 = vmul.f32 %v724_v49, %v1669_v52  ;;  %v739_v5 = vmul.f32 %v738_v63, %v1669_v52 }
  0xb7   : > { %693 = vrot.lane.b32.xlu2 %v689_v18, %s1445_s9  ;;  %v497_v58 = vmul.f32 %v496_v54, %v1671_v53  ;;  %v511_v7 = vmul.f32 %v510_v4, %v1671_v53  ;;  %v625_v16 = vmul.f32 %v624_v10, %v1673_v55 }
  0xb8   : > { %465 = vrot.lane.b32.xlu1 %v461_v20, %s1445_s9 }
  0xbc   : > { %v303_v23 = vpop.permute.xlu0 %302  ;;  %v1624_v25 = vld [vmem:[#allocation2 + $0x50] sm:$0xff] }
  0xbd   : > { %v305_v24 = vpop.permute.xlu1 %304  ;;  %327 = vst.msk [vmem:[#allocation2 + $0x1] sm:$0xff] %vm326_vm2, %v303_v23  ;;  %v690_v26 = vmul.f32 %v688_v13, %v1624_v25  ;;  %v1628_v27 = vld [vmem:[#allocation2 + $0x20] sm:$0xff]  ;;  %v704_v38 = vmul.f32 %v702_v32, %v1624_v25  ;;  %v1661_v47 = vld [vmem:[#allocation2 + $0x51] sm:$0xff]  ;;  %v396_v13 = vstv %s1173_s1  ;;  %s1804_s1 = sld [smem:[#allocation8 + $0x8]] }
  0xbe   : > { %328 = vst.msk [vmem:[#allocation2 + $0x9] sm:$0xff] %vm326_vm2, %v305_v24  ;;  %v462_v28 = vmul.f32 %v460_v14, %v1628_v27  ;;  %v476_v41 = vmul.f32 %v474_v39, %v1628_v27  ;;  %v726_v51 = vmul.f32 %v724_v49, %v1661_v47  ;;  %v1681_v60 = vld [vmem:[#allocation2 + $0x21] sm:$0xff]  ;;  %v740_v1 = vmul.f32 %v738_v63, %v1661_v47  ;;  %v1711_v14 = vld [vmem:[#allocation2 + $0x4a] sm:$0xff]  ;;  %v1727_v23 = vld [vmem:[#allocation2 + $0x52] sm:$0xff] }
  0xbf   : > { %695 = vrot.lane.b32.xlu0 %v690_v26, %s1445_s9  ;;  %v498_v62 = vmul.f32 %v496_v54, %v1681_v60  ;;  %v512_v11 = vmul.f32 %v510_v4, %v1681_v60  ;;  %v761_v20 = vmul.f32 %v760_v15, %v1711_v14  ;;  %v1729_v24 = vld [vmem:[#allocation2 + $0x22] sm:$0xff]  ;;  %v683_v26 = vmul.f32 %v682_v22, %v1609_v17  ;;  %v1752_v39 = vld [vmem:[#allocation2 + $0x32] sm:$0xff] }
  0xc0   : > { %467 = vrot.lane.b32.xlu2 %v462_v28, %s1445_s9  ;;  %581 = vrot.lane.b32.xlu1 %v576_v29, %s1445_s9  ;;  %v532_v29 = vstv %s1714_s14  ;;  %v762_v32 = vmul.f32 %v760_v15, %v1727_v23  ;;  %v546_v4 = vstv %s1769_s16  ;;  %s1828_s14 = sld [smem:[#allocation8 + $0x3]]  ;;  %s1453_s16 = smov 16  }
  0xc1   : > { %v336_v15 = vstv %s1785_s2 }
  0xc4   : > { %v1639_v33 = vld [vmem:[#allocation2] sm:$0xff] }
  0xc5   : > { %v347_v35 = vmul.f32 %v346_v31, %v1639_v33  ;;  %v1647_v37 = vld [vmem:[#allocation2 + $0x8] sm:$0xff]  ;;  %v361_v46 = vmul.f32 %v360_v43, %v1639_v33 }
  0xc6   : > { %v348_v40 = vmul.f32 %v346_v31, %v1647_v37  ;;  %v362_v50 = vmul.f32 %v360_v43, %v1647_v37  ;;  %v1691_v2 = vld [vmem:[#allocation2 + $0x1] sm:$0xff]  ;;  %v1699_v8 = vld [vmem:[#allocation2 + $0x9] sm:$0xff]  ;;  %v677_v31 = vstv %s1717_s11  ;;  %s1184_s11 = sld [smem:[#allocation8 + $0xf]] }
  0xc7   : > { %579 = vrot.lane.b32.xlu0 %v575_v34, %s1445_s9  ;;  %v383_v6 = vmul.f32 %v382_v3, %v1691_v2  ;;  %v384_v9 = vmul.f32 %v382_v3, %v1699_v8  ;;  %v397_v18 = vmul.f32 %v396_v13, %v1691_v2  ;;  %v398_v28 = vmul.f32 %v396_v13, %v1699_v8  ;;  %v1777_v54 = vld [vmem:[#allocation2 + $0xa] sm:$0xff] }
  0xc8   : > { %707 = vrot.lane.b32.xlu2 %v703_v36, %s1446_s10  ;;  %351 = vrot.lane.b32.xlu1 %v347_v35, %s1445_s9  ;;  %v534_v34 = vmul.f32 %v532_v29, %v1729_v24  ;;  %v685_v17 = vadd.f32 %v683_v26, %v677_v31 }
  0xcf   : > { %709 = vrot.lane.b32.xlu0 %v704_v38, %s1446_s10  ;;  %v1750_v38 = vld [vmem:[#allocation2 + $0x1a] sm:$0xff] }
  0xd0   : > { %353 = vrot.lane.b32.xlu2 %v348_v40, %s1445_s9  ;;  %481 = vrot.lane.b32.xlu1 %v476_v41, %s1446_s10  ;;  %v646_v40 = vstv %s1725_s12  ;;  %v774_v41 = vstv %s1731_s28  ;;  %v533_v43 = vmul.f32 %v532_v29, %v1750_v38  ;;  %s1181_s12 = sld [smem:[#allocation8 + $0xc]] }
  0xd1   : > { %v432_v29 = vstv %s1804_s1  ;;  %s1194_s28 = sld [smem:[#allocation8 + $0x18]] }
  0xd7   : > { %479 = vrot.lane.b32.xlu0 %v475_v44, %s1446_s10  ;;  %v456_v44 = vmul.f32 %v454_v42, %v1628_v27 }
  0xd8   : > { %593 = vrot.lane.b32.xlu2 %v589_v45, %s1446_s10  ;;  %365 = vrot.lane.b32.xlu1 %v361_v46, %s1446_s10  ;;  %v647_v45 = vmul.f32 %v646_v40, %v1752_v39  ;;  %v775_v46 = vmul.f32 %v774_v41, %v1711_v14 }
  0xdf   : > { %595 = vrot.lane.b32.xlu0 %v590_v48, %s1446_s10  ;;  %v449_v48 = vstv %s1748_s15  ;;  %s1450_s15 = smov 64  }
  0xe0   : > { %367 = vrot.lane.b32.xlu2 %v362_v50, %s1446_s10  ;;  %731 = vrot.lane.b32.xlu1 %v726_v51, %s1445_s9  ;;  %v458_v49 = vadd.f32 %v456_v44, %v449_v48  ;;  %v1771_v50 = vld [vmem:[#allocation2 + $0x3a] sm:$0xff] }
  0xe1   : > { %v648_v56 = vmul.f32 %v646_v40, %v1771_v50 }
  0xe7   : > { %729 = vrot.lane.b32.xlu0 %v725_v57, %s1445_s9  ;;  %v418_v57 = vstv %s1759_s17  ;;  %s1451_s17 = smov 96  }
  0xe8   : > { %501 = vrot.lane.b32.xlu2 %v497_v58, %s1445_s9  ;;  %615 = vrot.lane.b32.xlu1 %v611_v59, %s1445_s9  ;;  %v776_v58 = vmul.f32 %v774_v41, %v1727_v23  ;;  %v420_v59 = vmul.f32 %v418_v57, %v1777_v54 }
  0xef   : > { %503 = vrot.lane.b32.xlu0 %v498_v62, %s1445_s9  ;;  %v718_v62 = vstv %s1767_s25  ;;  %s1452_s25 = smov 48  }
  0xf0   : > { %617 = vrot.lane.b32.xlu2 %v612_v0, %s1445_s9  ;;  %745 = vrot.lane.b32.xlu1 %v740_v1, %s1446_s10  ;;  %v1791_v0 = vld [vmem:[#allocation2 + $0x2] sm:$0xff]  ;;  %v340_v1 = vstv %s1773_s23  ;;  %s1454_s23 = smov 80  }
  0xf1   : > { %v342_v10 = vmul.f32 %v340_v1, %v1647_v37  ;;  %v433_v44 = vmul.f32 %v432_v29, %v1791_v0 }
  0xf3   : > { %v344_v37 = vadd.f32 %v342_v10, %v336_v15 }
  0xf7   : > { %743 = vrot.lane.b32.xlu0 %v739_v5, %s1446_s10  ;;  %v660_v5 = vstv %s1779_s8  ;;  %s1455_s8 = smov 112  }
  0xf8   : > { %387 = vrot.lane.b32.xlu2 %v383_v6, %s1445_s9  ;;  %515 = vrot.lane.b32.xlu1 %v511_v7, %s1446_s10  ;;  %v719_v6 = vmul.f32 %v718_v62, %v1669_v52  ;;  %v419_v7 = vmul.f32 %v418_v57, %v1791_v0  ;;  %v661_v13 = vmul.f32 %v660_v5, %v1752_v39 }
  0xff   : > { %389 = vrot.lane.b32.xlu0 %v384_v9, %s1445_s9  ;;  %v455_v9 = vmul.f32 %v454_v42, %v1613_v19 }
 0x100   : > { %517 = vrot.lane.b32.xlu2 %v512_v11, %s1446_s10  ;;  %631 = vrot.lane.b32.xlu1 %v626_v12, %s1446_s10  ;;  %v547_v12 = vmul.f32 %v546_v4, %v1750_v38 }
 0x101   : > { %v457_v19 = vadd.f32 %v455_v9, %v449_v48 }
 0x107   : > { %629 = vrot.lane.b32.xlu0 %v625_v16, %s1446_s10 }
 0x108   : > { %401 = vrot.lane.b32.xlu2 %v397_v18, %s1446_s10  ;;  %765 = vrot.lane.b32.xlu1 %v761_v20, %s1445_s9  ;;  %v568_v18 = vstv %s1794_s27 }
 0x10f   : > { %403 = vrot.lane.b32.xlu0 %v398_v28, %s1446_s10  ;;  %v548_v28 = vmul.f32 %v546_v4, %v1729_v24 }
 0x110   : > { %767 = vrot.lane.b32.xlu2 %v762_v32, %s1445_s9  ;;  %539 = vrot.lane.b32.xlu1 %v534_v34, %s1445_s9  ;;  %v570_v32 = vmul.f32 %v568_v18, %v1621_v21  ;;  %v662_v34 = vmul.f32 %v660_v5, %v1771_v50 }
 0x111   : > { %v694_v35 = vpop.permute.xlu2 %693 }
 0x112   : > { %v699_v36 = vadd.f32 %v694_v35, %v685_v17  ;;  %v434_v17 = vmul.f32 %v432_v29, %v1777_v54  ;;  %v563_v35 = vstv %s1811_s29 }
 0x113   : > { %v572_v40 = vadd.f32 %v570_v32, %v563_v35 }
 0x117   : > { %537 = vrot.lane.b32.xlu0 %v533_v43, %s1445_s9  ;;  %v569_v43 = vmul.f32 %v568_v18, %v1636_v30  ;;  %v376_v30 = vstv %s1828_s14  ;;  %s1217_s14 = sshll.u32 %s1508_s22, 4 }
 0x118   : > { %651 = vrot.lane.b32.xlu2 %v647_v45, %s1445_s9  ;;  %779 = vrot.lane.b32.xlu1 %v775_v46, %s1446_s10  ;;  %v341_v45 = vmul.f32 %v340_v1, %v1639_v33  ;;  %v378_v33 = vmul.f32 %v376_v30, %v1699_v8  ;;  %v377_v29 = vmul.f32 %v376_v30, %v1691_v2 }
 0x119   : > { %v571_v46 = vadd.f32 %v569_v43, %v563_v35  ;;  %v412_v43 = vstv %s1855_s7  ;;  %s1059_s7 = scalar_lea.hbm %s1961_s5, %s1217_s14 }
 0x11a   : > { %v468_v27 = vpop.permute.xlu2 %467 }
 0x11b   : > { %v1775_v51 = vadd.f32 %v468_v27, %v458_v49  ;;  %v343_v49 = vadd.f32 %v341_v45, %v336_v15  ;;  %v720_v15 = vmul.f32 %v718_v62, %v1661_v47 }
 0x11f   : > { %653 = vrot.lane.b32.xlu0 %v648_v56, %s1445_s9  ;;  %v684_v56 = vmul.f32 %v682_v22, %v1624_v25 }
 0x120   : > { %781 = vrot.lane.b32.xlu2 %v776_v58, %s1446_s10  ;;  %425 = vrot.lane.b32.xlu1 %v420_v59, %s1445_s9 }
 0x122   : > { %v708_v63 = vpop.permute.xlu2 %707 }
 0x123   : > { %v713_v3 = vadd.f32 %v708_v63, %v699_v36 }
 0x125   : > { %v1806_v11 = vadd.f32 %v719_v6, %v713_v3  ;;  %v686_v6 = vadd.f32 %v684_v56, %v677_v31 }
 0x127   : > { %423 = vrot.lane.b32.xlu0 %v419_v7, %s1445_s9  ;;  %s1826_s9 = sld [smem:[#allocation8 + $0x15]] }
 0x128   : > { %551 = vrot.lane.b32.xlu2 %v547_v12, %s1446_s10  ;;  %665 = vrot.lane.b32.xlu1 %v661_v13, %s1446_s10  ;;  %v490_v13 = vstv %s1181_s12 }
 0x129   : > { %v491_v31 = vmul.f32 %v490_v13, %v1671_v53 }
 0x12a   : > { %v466_v52 = vpop.permute.xlu1 %465  ;;  %v354_v16 = vpop.permute.xlu2 %353 }
 0x12b   : > { %v471_v20 = vadd.f32 %v466_v52, %v457_v19  ;;  %v358_v26 = vadd.f32 %v354_v16, %v344_v37  ;;  %v492_v19 = vmul.f32 %v490_v13, %v1681_v60 }
 0x12d   : > { %v604_v27 = vstv %s1826_s9  ;;  %s1168_s9 = sshll.u32 %s1587_s26, 4 }
 0x12e   : > { %v605_v4 = vmul.f32 %v604_v27, %v1673_v55  ;;  %v606_v47 = vmul.f32 %v604_v27, %v1683_v61 }
 0x12f   : > { %553 = vrot.lane.b32.xlu0 %v548_v28, %s1446_s10 }
 0x130   : > { %667 = vrot.lane.b32.xlu2 %v662_v34, %s1446_s10  ;;  %439 = vrot.lane.b32.xlu1 %v434_v17, %s1446_s10 }
 0x131   : > { %v696_v36 = vpop.permute.xlu0 %695 }
 0x132   : > { %v582_v41 = vpop.permute.xlu1 %581  ;;  %v594_v42 = vpop.permute.xlu2 %593  ;;  %v700_v25 = vadd.f32 %v696_v36, %v686_v6 }
 0x133   : > { %v586_v21 = vadd.f32 %v582_v41, %v572_v40 }
 0x137   : > { %437 = vrot.lane.b32.xlu0 %v433_v44, %s1446_s10  ;;  %s1204_s10 = sld [smem:[#allocation8 + $0x21]] }
 0x139   : > { %v580_v48 = vpop.permute.xlu0 %579 }
 0x13a   : > { %v585_v57 = vadd.f32 %v580_v48, %v571_v46  ;;  %v368_v58 = vpop.permute.xlu2 %367  ;;  %v352_v59 = vpop.permute.xlu1 %351  ;;  %v526_v48 = vstv %s1184_s11  ;;  %s271_s11 = scalar_lea.vmem [#allocation11], %s1168_s9 }
 0x13b   : > { %v372_v63 = vadd.f32 %v368_v58, %v358_v26  ;;  %v357_v3 = vadd.f32 %v352_v59, %v343_v49  ;;  %v528_v59 = vmul.f32 %v526_v48, %v1729_v24 }
 0x13c   : > { %v599_v1 = vadd.f32 %v594_v42, %v585_v57  ;;  %v413_v57 = vmul.f32 %v412_v43, %v1791_v0 }
 0x13d   : > { %v1841_v5 = vadd.f32 %v378_v33, %v372_v63  ;;  %v754_v2 = vstv %s1204_s10 }
 0x13e   : > { %v1845_v7 = vadd.f32 %v605_v4, %v599_v1  ;;  %v756_v56 = vmul.f32 %v754_v2, %v1727_v23  ;;  %v527_v23 = vmul.f32 %v526_v48, %v1750_v38 }
 0x141   : > { %v710_v22 = vpop.permute.xlu0 %709 }
 0x142   : > { %v714_v9 = vadd.f32 %v710_v22, %v700_v25  ;;  %v502_v10 = vpop.permute.xlu2 %501  ;;  %v482_v12 = vpop.permute.xlu1 %481  ;;  %v755_v22 = vmul.f32 %v754_v2, %v1711_v14 }
 0x143   : > { %v486_v8 = vadd.f32 %v482_v12, %v1775_v51 }
 0x144   : > { %v722_v55 = vadd.f32 %v720_v15, %v714_v9  ;;  %v640_v15 = vstv %s1194_s28  ;;  %s1061_s28 = sshll.u32 %s271_s11, 4  ;;  %s1062_s28 = int_to_ptr.vmem [resolvable:$true] %s1061_s28 }
 0x145   : > { %v494_v37 = vadd.f32 %v492_v19, %v486_v8  ;;  %v642_v19 = vmul.f32 %v640_v15, %v1771_v50 }
 0x149   : > { %v480_v52 = vpop.permute.xlu0 %479 }
 0x14a   : > { %v485_v16 = vadd.f32 %v480_v52, %v471_v20  ;;  %v618_v18 = vpop.permute.xlu2 %617  ;;  %v366_v26 = vpop.permute.xlu1 %365 }
 0x14b   : > { %v371_v28 = vadd.f32 %v366_v26, %v357_v3 }
 0x14c   : > { %v493_v32 = vadd.f32 %v491_v31, %v485_v16  ;;  %v641_v31 = vmul.f32 %v640_v15, %v1752_v39 }
 0x14d   : > { %v379_v34 = vadd.f32 %v377_v29, %v371_v28 }
 0x14e   : > { %v507_v17 = vadd.f32 %v502_v10, %v493_v32 }
 0x151   : > { %v596_v35 = vpop.permute.xlu0 %595 }
 0x152   : > { %v600_v51 = vadd.f32 %v596_v35, %v586_v21  ;;  %v388_v62 = vpop.permute.xlu2 %387  ;;  %v732_v60 = vpop.permute.xlu1 %731 }
 0x153   : > { %v393_v36 = vadd.f32 %v388_v62, %v379_v34  ;;  %v736_v44 = vadd.f32 %v732_v60, %v722_v55  ;;  %v414_v34 = vmul.f32 %v412_v43, %v1777_v54 }
 0x154   : > { %v608_v40 = vadd.f32 %v606_v47, %v600_v51 }
 0x156   : > { %v622_v41 = vadd.f32 %v618_v18, %v608_v40 }
 0x159   : > { %v730_v53 = vpop.permute.xlu0 %729 }
 0x15a   : > { %v518_v20 = vpop.permute.xlu2 %517  ;;  %v616_v42 = vpop.permute.xlu1 %615  ;;  %v735_v33 = vadd.f32 %v730_v53, %v1806_v11 }
 0x15b   : > { %v621_v55 = vadd.f32 %v616_v42, %v1845_v7 }
 0x161   : > { %v504_v45 = vpop.permute.xlu0 %503 }
 0x162   : > { %v508_v46 = vadd.f32 %v504_v45, %v494_v37  ;;  %v402_v61 = vpop.permute.xlu2 %401  ;;  %v746_v21 = vpop.permute.xlu1 %745 }
 0x163   : > { %v407_v49 = vadd.f32 %v402_v61, %v393_v36  ;;  %v750_v27 = vadd.f32 %v746_v21, %v736_v44 }
 0x164   : > { %v522_v58 = vadd.f32 %v518_v20, %v508_v46 }
 0x165   : > { %v758_v30 = vadd.f32 %v756_v56, %v750_v27  ;;  %v1861_v63 = vadd.f32 %v413_v57, %v407_v49  ;;  %v1447_v56 = vmov 1983009808  }
 0x166   : > { %v530_v3 = vadd.f32 %v528_v59, %v522_v58  ;;  %v804_v57 = vunpack.c.l.s4 %v1447_v56 }
 0x169   : > { %v744_v1 = vpop.permute.xlu0 %743 }
 0x16a   : > { %v749_v4 = vadd.f32 %v744_v1, %v735_v33  ;;  %v768_v6 = vpop.permute.xlu2 %767  ;;  %v516_v25 = vpop.permute.xlu1 %515  ;;  %v1448_v1 = vmov 1934713408  }
 0x16b   : > { %v521_v9 = vadd.f32 %v516_v25, %v507_v17  ;;  %v772_v37 = vadd.f32 %v768_v6, %v758_v30 }
 0x16c   : > { %v757_v0 = vadd.f32 %v755_v22, %v749_v4  ;;  %v828_v4 = vunpack.c.l.s4 %v1448_v1 }
 0x16d   : > { %v529_v10 = vadd.f32 %v527_v23, %v521_v9  ;;  %v805_v9 = vunpack.c.0.s8 %v804_v57 }
 0x171   : > { %v390_v12 = vpop.permute.xlu0 %389 }
 0x172   : > { %v652_v24 = vpop.permute.xlu2 %651  ;;  %v632_v13 = vpop.permute.xlu1 %631  ;;  %v394_v28 = vadd.f32 %v390_v12, %v1841_v5 }
 0x173   : > { %v636_v8 = vadd.f32 %v632_v13, %v622_v41 }
 0x175   : > { %v644_v11 = vadd.f32 %v642_v19, %v636_v8  ;;  %v1883_v8 = vunpack.c.0.s8 %v828_v4 }
 0x179   : > { %v630_v52 = vpop.permute.xlu0 %629 }
 0x17a   : > { %v635_v14 = vadd.f32 %v630_v52, %v621_v55  ;;  %v782_v16 = vpop.permute.xlu2 %781  ;;  %v766_v38 = vpop.permute.xlu1 %765 }
 0x17b   : > { %v786_v18 = vadd.f32 %v782_v16, %v772_v37  ;;  %v771_v17 = vadd.f32 %v766_v38, %v757_v0 }
 0x17c   : > { %v643_v26 = vadd.f32 %v641_v31, %v635_v14 }
 0x17d   : > { %789 = vst.msk [vmem:[#allocation3 + $0x38] sm:$0xff] %vm445_vm3, %v786_v18 }
 0x17e   : > { %v657_v20 = vadd.f32 %v652_v24, %v643_v26 }
 0x181   : > { %v404_v29 = vpop.permute.xlu0 %403 }
 0x182   : > { %v408_v32 = vadd.f32 %v404_v29, %v394_v28  ;;  %v540_v50 = vpop.permute.xlu1 %539  ;;  %v552_v35 = vpop.permute.xlu2 %551 }
 0x183   : > { %v544_v43 = vadd.f32 %v540_v50, %v530_v3 }
 0x184   : > { %v416_v7 = vadd.f32 %v414_v34, %v408_v32  ;;  %v797_v27 = vld [vmem:[#allocation3 + $0x38] sm:$0xff] }
 0x185   : > { %v867_v25 = vrot.slane %v797_v27, 4 }
 0x189   : > { %v538_v47 = vpop.permute.xlu0 %537 }
 0x18a   : > { %v543_v39 = vadd.f32 %v538_v47, %v529_v10  ;;  %v780_v51 = vpop.permute.xlu1 %779  ;;  %v668_v41 = vpop.permute.xlu2 %667 }
 0x18b   : > { %v785_v62 = vadd.f32 %v780_v51, %v771_v17 }
 0x18c   : > { %v557_v60 = vadd.f32 %v552_v35, %v543_v39 }
 0x18d   : > { %788 = vst.msk [vmem:[#allocation3 + $0x30] sm:$0xff] %vm445_vm3, %v785_v62 }
 0x18e   : > { %560 = vst.msk [vmem:[#allocation3 + $0x10] sm:$0xff] %vm445_vm3, %v557_v60 }
 0x191   : > { %v654_v36 = vpop.permute.xlu0 %653 }
 0x192   : > { %v658_v40 = vadd.f32 %v654_v36, %v644_v11  ;;  %v426_v5 = vpop.permute.xlu1 %425 }
 0x193   : > { %v430_v44 = vadd.f32 %v426_v5, %v416_v7 }
 0x194   : > { %v672_v53 = vadd.f32 %v668_v41, %v658_v40  ;;  %v796_v30 = vld [vmem:[#allocation3 + $0x30] sm:$0xff] }
 0x195   : > { %v792_v59 = vld [vmem:[#allocation3 + $0x10] sm:$0xff]  ;;  %v811_v0 = vrot.slane %v796_v30, 4 }
 0x196   : > { %675 = vst.msk [vmem:[#allocation3 + $0x28] sm:$0xff] %vm445_vm3, %v672_v53 }
 0x197   : > { %v812_v14 = vsel %vm799_vm4, %v811_v0, %v792_v59 }
 0x198   : > { %v818_v34 = vperm.slane %v812_v14, %v805_v9 }
 0x199   : > { %v424_v54 = vpop.permute.xlu0 %423 }
 0x19a   : > { %v666_v42 = vpop.permute.xlu1 %665  ;;  %v429_v48 = vadd.f32 %v424_v54, %v1861_v63  ;;  %v813_v63 = vrot.slane %v792_v59, 4  ;;  %v823_v40 = vrot.slane %v818_v34, 4 }
 0x19b   : > { %v671_v2 = vadd.f32 %v666_v42, %v657_v20 }
 0x19c   : > { %v814_v31 = vsel %vm799_vm4, %v796_v30, %v813_v63 }
 0x19d   : > { %674 = vst.msk [vmem:[#allocation3 + $0x20] sm:$0xff] %vm445_vm3, %v671_v2  ;;  %v795_v49 = vld [vmem:[#allocation3 + $0x28] sm:$0xff]  ;;  %v822_v50 = vperm.slane %v814_v31, %v805_v9 }
 0x19e   : > { %v855_v6 = vrot.slane %v795_v49, 4 }
 0x19f   : > { %v835_v60 = vrot.slane %v822_v50, 4 }
 0x1a1   : > { %v554_v45 = vpop.permute.xlu0 %553 }
 0x1a2   : > { %v558_v46 = vadd.f32 %v554_v45, %v544_v43  ;;  %v440_v61 = vpop.permute.xlu1 %439 }
 0x1a3   : > { %v444_v21 = vadd.f32 %v440_v61, %v430_v44 }
 0x1a4   : > { %561 = vst.msk [vmem:[#allocation3 + $0x18] sm:$0xff] %vm445_vm3, %v558_v46  ;;  %v794_v55 = vld [vmem:[#allocation3 + $0x20] sm:$0xff] }
 0x1a5   : > { %447 = vst.msk [vmem:[#allocation3 + $0x8] sm:$0xff] %vm445_vm3, %v444_v21  ;;  %v798_v26 = vrot.slane %v794_v55, 4 }
 0x1a9   : > { %v438_v58 = vpop.permute.xlu0 %437 }
 0x1aa   : > { %v443_v33 = vadd.f32 %v438_v58, %v429_v48 }
 0x1ab   : > { %v793_v3 = vld [vmem:[#allocation3 + $0x18] sm:$0xff] }
 0x1ac   : > { %446 = vst.msk [vmem:[#allocation3] sm:$0xff] %vm445_vm3, %v443_v33  ;;  %v791_v22 = vld [vmem:[#allocation3 + $0x8] sm:$0xff]  ;;  %v869_v23 = vrot.slane %v793_v3, 4  ;;  %v868_v12 = vsel %vm799_vm4, %v867_v25, %v793_v3 }
 0x1ad   : > { %v856_v10 = vsel %vm799_vm4, %v855_v6, %v791_v22  ;;  %v857_v24 = vrot.slane %v791_v22, 4  ;;  %v874_v37 = vperm.slane %v868_v12, %v805_v9  ;;  %v988_v12 = vld [vmem:[%s1960_s4] sm:$0xff] }
 0x1ae   : > { %v862_v13 = vperm.slane %v856_v10, %v805_v9  ;;  %v870_v15 = vsel %vm799_vm4, %v797_v27, %v869_v23 }
 0x1af   : > { %v858_v19 = vsel %vm799_vm4, %v795_v49, %v857_v24  ;;  %v878_v11 = vperm.slane %v870_v15, %v805_v9  ;;  %v879_v51 = vrot.slane %v874_v37, 4  ;;  %v1456_v24 = vmov 0  }
 0x1b0   : > { %v881_v52 = vrot.slane %v862_v13, 4  ;;  %v866_v16 = vperm.slane %v858_v19, %v805_v9  ;;  %1301 = vset.pattern.permute.xlu1 %v1456_v24  ;;  %1302 = vset.pattern.permute.xlu0 %v1456_v24 }
 0x1b1   : > { %v891_v38 = vrot.slane %v878_v11, 4  ;;  %v880_v2 = vsel %vm799_vm4, %v879_v51, %v862_v13 }
 0x1b2   : > { %v882_v18 = vsel %vm799_vm4, %v874_v37, %v881_v52  ;;  %v886_v46 = vperm.slane %v880_v2, %v1883_v8  ;;  %v893_v57 = vrot.slane %v866_v16, 4 }
 0x1b3   : > { %v890_v28 = vperm.slane %v882_v18, %v1883_v8  ;;  %v892_v29 = vsel %vm799_vm4, %v891_v38, %v866_v16  ;;  %v790_v32 = vld [vmem:[#allocation3] sm:$0xff] }
 0x1b4   : > { %v898_v7 = vperm.slane %v892_v29, %v1883_v8  ;;  %v801_v17 = vrot.slane %v790_v32, 4  ;;  %v800_v35 = vsel %vm799_vm4, %v798_v26, %v790_v32  ;;  %v903_v48 = vrot.slane %v886_v46, 4 }
 0x1b5   : > { %944 = vrot.lane.b32.xlu2 %v890_v28, %s1449_s13  ;;  %v806_v47 = vperm.slane %v800_v35, %v805_v9  ;;  %v905_v61 = vrot.slane %v890_v28, 4  ;;  %v894_v33 = vsel %vm799_vm4, %v878_v11, %v893_v57 }
 0x1b6   : > { %952 = vrot.lane.b32.xlu0 %v898_v7, %s1450_s15  ;;  %v802_v39 = vsel %vm799_vm4, %v794_v55, %v801_v17  ;;  %v904_v56 = vsel %vm799_vm4, 0.0, %v903_v48  ;;  %v907_v59 = vrot.slane %v898_v7, 4  ;;  %v902_v6 = vperm.slane %v894_v33, %v1883_v8  ;;  %v987_v7 = vld [vmem:[%s1959_s3] sm:$0xff] }
 0x1b7   : > { %v810_v62 = vperm.slane %v802_v39, %v805_v9  ;;  %v825_v36 = vrot.slane %v806_v47, 4  ;;  %v824_v54 = vsel %vm799_vm4, %v823_v40, %v806_v47  ;;  %v906_v49 = vsel %vm799_vm4, 0.0, %v905_v61 }
 0x1b8   : > { %v830_v45 = vperm.slane %v824_v54, %v1883_v8  ;;  %v908_v1 = vsel %vm799_vm4, 0.0, %v907_v59  ;;  %v909_v22 = vrot.slane %v902_v6, 4 }
 0x1b9   : > { %v836_v5 = vsel %vm799_vm4, %v835_v60, %v810_v62  ;;  %v826_v41 = vsel %vm799_vm4, %v818_v34, %v825_v36  ;;  %v837_v53 = vrot.slane %v810_v62, 4 }
 0x1ba   : > { %v842_v20 = vperm.slane %v836_v5, %v1883_v8  ;;  %v834_v42 = vperm.slane %v826_v41, %v1883_v8  ;;  %v847_v21 = vrot.slane %v830_v45, 4  ;;  %v910_v23 = vsel %vm799_vm4, 0.0, %v909_v22 }
 0x1bb   : > { %v838_v43 = vsel %vm799_vm4, %v822_v50, %v837_v53 }
 0x1bc   : > { %916 = vrot.lane.b32.xlu1 %v834_v42, %s1449_s13  ;;  %v846_v44 = vperm.slane %v838_v43, %v1883_v8  ;;  %v848_v27 = vsel %vm799_vm4, 0.0, %v847_v21  ;;  %v851_v58 = vrot.slane %v842_v20, 4  ;;  %v849_v30 = vrot.slane %v834_v42, 4  ;;  %s1063_s13 = sshll.u32 %s1059_s7, 4  ;;  %s1064_s13 = int_to_ptr.hbm [resolvable:$true] %s1063_s13 }
 0x1bd   : > { %924 = vrot.lane.b32.xlu2 %v842_v20, %s1450_s15  ;;  %s1048_s15 = scalar_lea.sflag [#allocation6], %s1587_s26 }
 0x1be   : > { %932 = vrot.lane.b32.xlu0 %v846_v44, %s1451_s17  ;;  %v852_v3 = vsel %vm799_vm4, 0.0, %v851_v58  ;;  %v850_v4 = vsel %vm799_vm4, 0.0, %v849_v30  ;;  %v853_v25 = vrot.slane %v846_v44, 4 }
 0x1c0   : > { %v854_v9 = vsel %vm799_vm4, 0.0, %v853_v25 }
 0x1c4   : > { %948 = vrot.lane.b32.xlu1 %v906_v49, %s1452_s25 }
 0x1c5   : > { %912 = vrot.lane.b32.xlu2 %v848_v27, %s1453_s16 }
 0x1c6   : > { %940 = vrot.lane.b32.xlu0 %v904_v56, %s1453_s16 }
 0x1cc   : > { %928 = vrot.lane.b32.xlu1 %v852_v3, %s1454_s23 }
 0x1cd   : > { %956 = vrot.lane.b32.xlu2 %v908_v1, %s1454_s23  ;;  %s1383_s23 = scalar_lea.hbm %s1961_s5, 32 }
 0x1ce   : > { %920 = vrot.lane.b32.xlu0 %v850_v4, %s1452_s25 }
 0x1d4   : > { %960 = vrot.lane.b32.xlu1 %v902_v6, %s1451_s17  ;;  %s1377_s17 = sshra.s32 %s1064_s13, 4  ;;  %s1378_s17 = int_to_ptr.hbm [resolvable:$true] %s1377_s17 }
 0x1d5   : > { %936 = vrot.lane.b32.xlu2 %v854_v9, %s1455_s8  ;;  %s1379_s22 = scalar_lea.hbm %s1378_s17, 16  ;;  %p1384_p0 = scmp.lt.s32.totalorder %s1378_s17, %s1961_s5 }
 0x1d6   : > { %964 = vrot.lane.b32.xlu0 %v910_v23, %s1455_s8  ;;  %p1380_p4 = scmp.ne.s32.totalorder %s1378_s17, %s1379_s22  ;;  %p1385_p7 = scmp.lt.s32.totalorder %s1383_s23, %s1379_s22 }
 0x1d8   : > { %p1381_p6 = pnand %p1380_p4, %p1539_p11  ;;  %p1386_p5 = por %p1385_p7, %p1384_p0 }
 0x1da   : > { %p1382_p13 = pneg %p1381_p6 }
 0x1dc   : > { %991 = vperm.xlu1 %1301, %v988_v12   ;;  %p1387_p8 = pnand %p1386_p5, %p1382_p13 }
 0x20f   : > { %v945_v63 = vpop.permute.xlu2 %944 }
 0x217   : > { %v925_v0 = vpop.permute.xlu2 %924 }
 0x21f   : > { %v913_v15 = vpop.permute.xlu2 %912 }
 0x220   : > { %v967_v14 = vsel %vm445_vm3, %v830_v45, %v913_v15 }
 0x227   : > { %v957_v55 = vpop.permute.xlu2 %956 }
 0x228   : > { %v953_v10 = vpop.permute.xlu0 %952 }
 0x22e   : > { %v917_v13 = vpop.permute.xlu1 %916 }
 0x22f   : > { %v969_v16 = vsel %vm968_vm5, %v967_v14, %v917_v13  ;;  %v937_v50 = vpop.permute.xlu2 %936 }
 0x230   : > { %v933_v8 = vpop.permute.xlu0 %932 }
 0x236   : > { %v949_v19 = vpop.permute.xlu1 %948 }
 0x238   : > { %v941_v11 = vpop.permute.xlu0 %940 }
 0x239   : > { %v980_v37 = vsel %vm445_vm3, %v886_v46, %v941_v11 }
 0x23a   : > { %v981_v52 = vsel %vm968_vm5, %v980_v37, %v945_v63 }
 0x23b   : > { %v982_v38 = vsel %vm970_vm6, %v981_v52, %v949_v19 }
 0x23c   : > { %v983_v29 = vsel %vm972_vm7, %v982_v38, %v953_v10 }
 0x23d   : > { %v984_v47 = vsel %vm974_vm9, %v983_v29, %v957_v55 }
 0x23e   : > { %v929_v31 = vpop.permute.xlu1 %928 }
 0x240   : > { %v921_v18 = vpop.permute.xlu0 %920 }
 0x241   : > { %v971_v26 = vsel %vm970_vm6, %v969_v16, %v921_v18 }
 0x242   : > { %v973_v28 = vsel %vm972_vm7, %v971_v26, %v925_v0 }
 0x243   : > { %v975_v32 = vsel %vm974_vm9, %v973_v28, %v929_v31 }
 0x244   : > { %v977_v34 = vsel %vm976_vm8, %v975_v32, %v933_v8 }
 0x245   : > { %v979_v17 = vsel %vm978_vm10, %v977_v34, %v937_v50 }
 0x246   : > { %v961_v35 = vpop.permute.xlu1 %960  ;;  %1207 = vmatpush.msk.msra.mxu0 %vm998_vm11, %v979_v17 }
 0x247   : > { %v985_v39 = vsel %vm976_vm8, %v984_v47, %v961_v35  ;;  %1208 = vmatmul.msk.f32.vlgmr.msra.gmra.mxu0 %vm994_vm12, %v987_v7 }
 0x248   : > { %v965_v51 = vpop.permute.xlu0 %964 }
 0x249   : > { %v986_v62 = vsel %vm978_vm10, %v985_v39, %v965_v51 }
 0x24a   : > { %1209 = vmatpush.msk.msra.mxu1 %vm998_vm11, %v986_v62 }
 0x24b   : > { %1210 = vmatmul.msk.f32.vlgmr.msra.gmra.mxu1 %vm994_vm12, %v987_v7 }
 0x24e   : > { %v992_v60 = vpop.permute.xlu1 %991 }
 0x2c4   : > { %v1022_v36 = vpop.f32.mrf.mxu0 }
 0x2c5   : > { %v1023_v40 = vadd.f32 %v1022_v36, %v992_v60 }
 0x2c7   : > { %1045 = vst [vmem:[%s271_s11] sm:$0xff] %v1023_v40 }
 0x2c8   : > { %v1042_v5 = vpop.f32.mrf.mxu1 }
 0x2c9   : > { %v1043_v41 = vadd.f32 %v1042_v5, %v992_v60 }
 0x2cb   : > { %1046 = vst [vmem:[%s271_s11 + $0x8] sm:$0xff] %v1043_v41 }
 0x2cc   : > { %1390 = shalt.err (!%p1387_p8)
}
 0x2cd   : > { %1228 = dma.vmem_to_hbm [thread:$0]  (%p1539_p11), %s1062_s28, 256, %s1064_s13, %s1048_s15  }
 0x2ce PF: > { %s1075_s26 = sand.u32 1, %s1425_s18   ;;  %p1973_p9 = scmp.ge.s32.totalorder %s1437_s21, 2 }
 0x2cf   : > { %s1076_s27 = scalar_lea.sflag [#allocation6], %s1075_s26 }
 0x2d0   : > { %p1242_p10 = pnand %p1973_p9, %p1543_p12 }
 0x2d2   : > { %p1243_p1 = pneg %p1242_p10 }
 0x2d4   : > { %1420 = dma.done.wait (%p1243_p1), %s1076_s27, 256  }
 0x2d5   : > { %1422 = vsyncadd (%p1243_p1), %s1076_s27, 4294967040  ;;  %s1974_s1 = sld [smem:[#allocation16_spill]]  ;;  %p20_p2 = scmp.ge.s32.totalorder %s1512_s24, 4  }
 0x2d6   : > { %s1975_s18 = smov %s1429_s19  ;;  %s1976_s19 = smov %s1433_s20 }
 0x2d7   : > { %s1978_s21 = smov %s1512_s24  ;;  %22 = sbr.rel (!%p20_p2) target bundleno = 10 (0xa), region = 100 }
 0x2db   : > { %s1977_s20 = smov %s1974_s1 }
 0x2dc   :  { %1082 = vsyncpa [#allocation5], 1 }
 0x2dd   :  { %1084 = vsyncpa [#allocation5 + $0x1], 1 }
 0x2de   :  { %1085 = vsyncpa [#allocation6], 1 }
 0x2df   :  { %1087 = vsyncpa [#allocation6 + $0x1], 1 }
 0x2e0   :  { %1088 = vsyncpa [#allocation7], 1 }
 0x2e1   :  { %1090 = vsyncpa [#allocation7 + $0x1], 1 }
 0x2e2   :  { %1091 = vsyncpa [#allocation10], 1 }

</bundles_post_ra>
